<compile_context>
chip_gen: v5e
topology: v5e:2x2
jax: 0.10.0
libtpu: 0.0.40
codegen_flags: <defaults>
</compile_context>

<pallas_src>
import functools
import math

import jax
import jax.numpy as jnp
from jax.experimental import pallas as pl
from jax.experimental.pallas import tpu as pltpu


# ----------------------------- in-kernel helpers -----------------------------

def _layernorm(x, g, b, eps=1e-5):
    mu = jnp.mean(x, axis=-1, keepdims=True)
    var = jnp.mean((x - mu) ** 2, axis=-1, keepdims=True)
    return (x - mu) * jax.lax.rsqrt(var + eps) * g + b


def _gelu(x):
    # exact (erf) GELU, matching torch.nn.GELU default
    return 0.5 * x * (1.0 + jax.lax.erf(x * (1.0 / math.sqrt(2.0))))


def _mm(x, w, b):
    """(B,S,Din) @ (Din,Dout) + (1,Dout) as one 2D MXU matmul.
    x is cast to the weight dtype (bf16) at the matmul boundary; accumulation
    and the bias add stay f32."""
    bsz, s, _ = x.shape
    y = jnp.dot(x.reshape(bsz * s, -1).astype(w.dtype), w,
                preferred_element_type=jnp.float32) + b
    return y.reshape(bsz, s, w.shape[-1])


# ------------------------------- Pallas kernels -------------------------------

def patch_embed_kernel(patches_ref, w_ref, b_ref, cls_ref, pos_ref, out_ref):
    """patches (B,N,CPP) @ W (CPP,E) + b; CLS row, patch rows and pad rows are
    written directly to out_ref (no sublane concatenate); pos embed added."""
    bsz, n, cpp = patches_ref.shape
    s_pad = out_ref.shape[1]
    w = w_ref[...]                                          # (CPP, E) bf16
    e = w.shape[-1]

    p = patches_ref[...].reshape(bsz * n, cpp).astype(w.dtype)
    emb = jnp.dot(p, w, preferred_element_type=jnp.float32).reshape(bsz, n, e)
    emb = emb + b_ref[...]                                  # (1,E) f32 broadcast

    pos = pos_ref[...]                                      # (N+1, E) f32
    cls_row = (cls_ref[...] + pos[0:1, :])[None]            # (1,1,E)
    out_ref[:, 0:1, :] = jnp.broadcast_to(cls_row, (bsz, 1, e))
    out_ref[:, 1:n + 1, :] = emb + pos[1:n + 1, :][None]
    if s_pad > n + 1:                                       # zero the pad rows
        out_ref[:, n + 1:, :] = jnp.zeros((bsz, s_pad - (n + 1), e), jnp.float32)


def transformer_kernel(heads, head_dim, s_real,
                       x_ref, ln1g_ref, ln1b_ref, wqkv_ref, bqkv_ref,
                       wo_ref, bo_ref, ln2g_ref, ln2b_ref,
                       w1_ref, b1_ref, w2_ref, b2_ref, out_ref):
    """grid = (batch_tiles, layers).  The residual stream lives in out_ref
    (same output block revisited across the 'arbitrary' layer axis)."""
    layer = pl.program_id(1)

    @pl.when(layer == 0)
    def _():
        out_ref[...] = x_ref[...]

    x = out_ref[...]                                        # (TB, Sp, E) f32
    tb, sp, _ = x.shape
    hd = heads * head_dim

    # additive key-padding mask (pad tokens are never attended to); hoisted
    # out of the head loop.
    if s_real < sp:
        kiota = jax.lax.broadcasted_iota(jnp.int32, (1, 1, sp), 2)
        mask_bias = jnp.where(kiota < s_real, 0.0, -1e30).astype(jnp.float32)
    else:
        mask_bias = None

    # --- multi-head self-attention (pre-LN); 1/sqrt(dh) folded into Wq/bq ---
    h = _layernorm(x, ln1g_ref[0], ln1b_ref[0])
    qkv = _mm(h, wqkv_ref[0], bqkv_ref[0])                  # (TB, Sp, 3*hd) f32

    # TODO(synk): fold the heads into one batched contraction (bqhd,bkhd->bhqk)
    # once multi-batch-dim dot_general lowering is confirmed on Mosaic; kept as
    # a static per-head unroll (single batch dim, known-good lowering) for now.
    head_outs = []
    for hh in range(heads):                                 # static unroll
        q_sl = slice(hh * head_dim, (hh + 1) * head_dim)
        k_sl = slice(hd + hh * head_dim, hd + (hh + 1) * head_dim)
        v_sl = slice(2 * hd + hh * head_dim, 2 * hd + (hh + 1) * head_dim)
        qh = qkv[..., q_sl].astype(jnp.bfloat16)
        kh = qkv[..., k_sl].astype(jnp.bfloat16)
        vh = qkv[..., v_sl].astype(jnp.bfloat16)
        s = jnp.einsum('bqd,bkd->bqk', qh, kh,
                       preferred_element_type=jnp.float32)
        if mask_bias is not None:
            s = s + mask_bias
        s = s - jnp.max(s, axis=-1, keepdims=True)
        p = jnp.exp(s)
        p = p * pl.reciprocal(jnp.sum(p, axis=-1, keepdims=True), approx=True)
        head_outs.append(jnp.einsum('bqk,bkd->bqd', p.astype(jnp.bfloat16), vh,
                                    preferred_element_type=jnp.float32))
    attn = jnp.concatenate(head_outs, axis=-1)              # (TB, Sp, hd)
    x = x + _mm(attn, wo_ref[0], bo_ref[0])

    # --- feed-forward (pre-LN) ---
    h2 = _layernorm(x, ln2g_ref[0], ln2b_ref[0])
    f = _gelu(_mm(h2, w1_ref[0], b1_ref[0]))
    out_ref[...] = x + _mm(f, w2_ref[0], b2_ref[0])


# --------------------------------- wrapper -----------------------------------

WKEYS = ['ln1_g', 'ln1_b', 'wqkv', 'bqkv', 'wo', 'bo',
         'ln2_g', 'ln2_b', 'w1', 'b1', 'w2', 'b2']


def vit_forward(x_img, params, *, patch_size, heads, head_dim, batch_tile=None):
    B, C, H, W = x_img.shape
    P = patch_size
    hp, wp = H // P, W // P
    n = hp * wp
    # im2col with (C, ph, pw) ordering inside each patch (Conv2d weight order)
    patches = (x_img.reshape(B, C, hp, P, wp, P)
               .transpose(0, 2, 4, 1, 3, 5)
               .reshape(B, n, C * P * P))

    E = params['patch_w'].shape[-1]
    F = params['w1'].shape[-1]
    L = params['ln1_g'].shape[0]
    hd = heads * head_dim
    s_real = n + 1
    s_pad = ((s_real + 7) // 8) * 8                       # sublane-aligned tokens

    if batch_tile is None:
        batch_tile = B // 2 if B % 2 == 0 else B          # 2 parallel tiles (v7x TCs)
    assert B % batch_tile == 0

    # ---------------- patch embedding (+ cls token, + pos embed) ----------------
    vmem = functools.partial(pl.BlockSpec, memory_space=pltpu.MemorySpace.VMEM)
    tokens = pl.pallas_call(
        patch_embed_kernel,
        out_shape=jax.ShapeDtypeStruct((B, s_pad, E), jnp.float32),
        in_specs=[vmem()] * 5,
        out_specs=vmem(),
    )(patches, params['patch_w'].astype(jnp.bfloat16), params['patch_b'],
      params['cls'], params['pos'])

    # ------------------------------ transformer --------------------------------
    # fold 1/sqrt(head_dim) into the Q projection (trace-time, free); weights bf16
    scale = 1.0 / math.sqrt(head_dim)
    layer_ops = {
        'ln1_g': params['ln1_g'], 'ln1_b': params['ln1_b'],
        'wqkv': params['wqkv'].at[:, :, :hd].multiply(scale).astype(jnp.bfloat16),
        'bqkv': params['bqkv'].at[:, :, :hd].multiply(scale),
        'wo': params['wo'].astype(jnp.bfloat16), 'bo': params['bo'],
        'ln2_g': params['ln2_g'], 'ln2_b': params['ln2_b'],
        'w1': params['w1'].astype(jnp.bfloat16), 'b1': params['b1'],
        'w2': params['w2'].astype(jnp.bfloat16), 'b2': params['b2'],
    }

    def layer_spec(shape):
        nd = len(shape)
        return pl.BlockSpec((1,) + tuple(shape[1:]),
                            lambda b, l, _nd=nd: (l,) + (0,) * (_nd - 1))

    wspecs = [layer_spec(layer_ops[k].shape) for k in WKEYS]
    x_spec = pl.BlockSpec((batch_tile, s_pad, E), lambda b, l: (b, 0, 0))

    flops = 2 * B * s_pad * L * (3 * E * hd + 2 * s_pad * hd + hd * E + 2 * E * F)
    transcendentals = B * s_pad * L * (heads * s_pad + F)
    bytes_accessed = (2 * L * (3 * E * hd + hd * E + 2 * E * F)   # bf16 weights
                      + 2 * B * s_pad * E * 4)                    # residual in/out
    cost = pl.CostEstimate(flops=flops, transcendentals=transcendentals,
                           bytes_accessed=bytes_accessed)

    encoded = pl.pallas_call(
        functools.partial(transformer_kernel, heads, head_dim, s_real),
        out_shape=jax.ShapeDtypeStruct((B, s_pad, E), jnp.float32),
        grid=(B // batch_tile, L),
        in_specs=[x_spec] + wspecs,
        out_specs=x_spec,
        input_output_aliases={0: 0},          # residual stream aliases the tokens
        cost_estimate=cost,
        compiler_params=pltpu.CompilerParams(
            dimension_semantics=("parallel", "arbitrary"),
            vmem_limit_bytes=48 * 1024 * 1024),
    )(tokens, *[layer_ops[k] for k in WKEYS])

    # ClsPooler
    return encoded[:, 0, :]


# --------------------------- pure-JAX reference check --------------------------

def vit_reference(x_img, params, *, patch_size, heads, head_dim):
    B, C, H, W = x_img.shape
    P = patch_size
    hp, wp = H // P, W // P
    n = hp * wp
    patches = (x_img.reshape(B, C, hp, P, wp, P)
               .transpose(0, 2, 4, 1, 3, 5)
               .reshape(B, n, C * P * P))
    emb = patches @ params['patch_w'] + params['patch_b']
    cls = jnp.broadcast_to(params['cls'], (B, 1, emb.shape[-1]))
    x = jnp.concatenate([cls, emb], axis=1) + params['pos']

    hd = heads * head_dim
    scale = 1.0 / math.sqrt(head_dim)
    L = params['ln1_g'].shape[0]
    for l in range(L):
        h = _layernorm(x, params['ln1_g'][l], params['ln1_b'][l])
        qkv = h @ params['wqkv'][l] + params['bqkv'][l]
        q, k, v = qkv[..., :hd], qkv[..., hd:2 * hd], qkv[..., 2 * hd:]
        outs = []
        for hh in range(heads):
            sl = slice(hh * head_dim, (hh + 1) * head_dim)
            s = jnp.einsum('bqd,bkd->bqk', q[..., sl], k[..., sl]) * scale
            p = jax.nn.softmax(s, axis=-1)
            outs.append(jnp.einsum('bqk,bkd->bqd', p, v[..., sl]))
        attn = jnp.concatenate(outs, axis=-1) @ params['wo'][l] + params['bo'][l]
        x = x + attn
        h2 = _layernorm(x, params['ln2_g'][l], params['ln2_b'][l])
        f = h2 @ params['w1'][l] + params['b1'][l]
        f = _gelu(f)
        f = f @ params['w2'][l] + params['b2'][l]
        x = x + f
    return x[:, 0, :]


# ----------------------------------- setup ------------------------------------

def init_params(key, *, C, P, E, L, heads, head_dim, F, n_patches):
    hd = heads * head_dim
    ks = jax.random.split(key, 16)

    def nrm(k, shape, scale=0.02):
        return (scale * jax.random.normal(k, shape)).astype(jnp.float32)

    return {
        # patch embedding (Conv2d(C, E, P, P) flattened to (C*P*P, E))
        'patch_w': nrm(ks[0], (C * P * P, E)),
        'patch_b': nrm(ks[1], (1, E)),
        # cls token (torch.rand) and positional embedding (torch.randn)
        'cls': jax.random.uniform(ks[2], (1, E), jnp.float32),
        'pos': jax.random.normal(ks[3], (n_patches + 1, E)).astype(jnp.float32),
        # per-layer weights stacked on a leading layer axis
        'ln1_g': jnp.ones((L, 1, E), jnp.float32),
        'ln1_b': jnp.zeros((L, 1, E), jnp.float32),
        'wqkv': nrm(ks[4], (L, E, 3 * hd)),
        'bqkv': nrm(ks[5], (L, 1, 3 * hd)),
        'wo':   nrm(ks[6], (L, hd, E)),
        'bo':   nrm(ks[7], (L, 1, E)),
        'ln2_g': jnp.ones((L, 1, E), jnp.float32),
        'ln2_b': jnp.zeros((L, 1, E), jnp.float32),
        'w1':   nrm(ks[8], (L, E, F)),
        'b1':   nrm(ks[9], (L, 1, F)),
        'w2':   nrm(ks[10], (L, F, E)),
        'b2':   nrm(ks[11], (L, 1, E)),
    }


if __name__ == "__main__":
    # small shapes consistent with the module
    B, C, H, W = 2, 4, 16, 16
    PATCH = 8
    EMBED = 32
    LAYERS = 2
    HEADS = 4
    HEAD_DIM = 8
    FFN = 64
    N_PATCHES = (H // PATCH) * (W // PATCH)   # 4 -> seq = 5 (padded to 8 inside)

    key = jax.random.PRNGKey(0)
    k_x, k_p = jax.random.split(key)
    x = jax.random.normal(k_x, (B, C, H, W), jnp.float32)
    params = init_params(k_p, C=C, P=PATCH, E=EMBED, L=LAYERS,
                         heads=HEADS, head_dim=HEAD_DIM, F=FFN,
                         n_patches=N_PATCHES)

    fwd = jax.jit(lambda img: vit_forward(img, params, patch_size=PATCH,
                                          heads=HEADS, head_dim=HEAD_DIM))
    out = jax.block_until_ready(fwd(x))
    assert out.shape == (B, EMBED), out.shape

    ref = vit_reference(x, params, patch_size=PATCH, heads=HEADS, head_dim=HEAD_DIM)
    # bf16 matmul operands + approx softmax reciprocal vs. pure-f32 reference
    assert jnp.allclose(out, ref, rtol=3e-2, atol=3e-2), \
        float(jnp.max(jnp.abs(out - ref)))

    print("KERNEL_OK")
</pallas_src>

<mosaic_0001>
module attributes {stable_mosaic.version = 11 : i64} {
  func.func @patch_embed_kernel(%arg0: memref<2x4x256xf32, #tpu.memory_space<vmem>>, %arg1: memref<256x32xbf16, #tpu.memory_space<vmem>>, %arg2: memref<1x32xf32, #tpu.memory_space<vmem>>, %arg3: memref<1x32xf32, #tpu.memory_space<vmem>>, %arg4: memref<5x32xf32, #tpu.memory_space<vmem>>, %arg5: memref<2x8x32xf32, #tpu.memory_space<vmem>>) attributes {dimension_semantics = [], scalar_prefetch = 0 : i64, scratch_operands = 0 : i64, tpu.core_type = #tpu.core_type<tc>} {
    %c0 = arith.constant 0 : index
    %c0_0 = arith.constant 0 : index
    %0 = vector.load %arg1[%c0, %c0_0] : memref<256x32xbf16, #tpu.memory_space<vmem>>, vector<256x32xbf16>
    %c0_1 = arith.constant 0 : index
    %c0_2 = arith.constant 0 : index
    %c0_3 = arith.constant 0 : index
    %1 = vector.load %arg0[%c0_1, %c0_2, %c0_3] : memref<2x4x256xf32, #tpu.memory_space<vmem>>, vector<2x4x256xf32>
    %2 = vector.shape_cast %1 : vector<2x4x256xf32> to vector<8x256xf32>
    %3 = arith.truncf %2 : vector<8x256xf32> to vector<8x256xbf16>
    %cst = arith.constant dense<0.000000e+00> : vector<8x32xf32>
    %4 = tpu.matmul %3, %0, %cst {dimension_numbers = #tpu.dot_dimension_numbers<[1], [0], [0], [1], [0, 0, 1, 1], [], []>} : vector<8x256xbf16>, vector<256x32xbf16>, vector<8x32xf32> -> vector<8x32xf32>
    %5 = vector.shape_cast %4 : vector<8x32xf32> to vector<2x4x32xf32>
    %c0_4 = arith.constant 0 : index
    %c0_5 = arith.constant 0 : index
    %6 = vector.load %arg2[%c0_4, %c0_5] : memref<1x32xf32, #tpu.memory_space<vmem>>, vector<1x32xf32>
    %7 = vector.shape_cast %6 : vector<1x32xf32> to vector<1x1x32xf32>
    %8 = vector.broadcast %7 : vector<1x1x32xf32> to vector<2x4x32xf32>
    %9 = arith.addf %5, %8 : vector<2x4x32xf32>
    %c0_6 = arith.constant 0 : index
    %c0_7 = arith.constant 0 : index
    %10 = vector.load %arg4[%c0_6, %c0_7] : memref<5x32xf32, #tpu.memory_space<vmem>>, vector<5x32xf32>
    %c0_8 = arith.constant 0 : index
    %c0_9 = arith.constant 0 : index
    %11 = vector.load %arg3[%c0_8, %c0_9] : memref<1x32xf32, #tpu.memory_space<vmem>>, vector<1x32xf32>
    %12 = vector.extract_strided_slice %10 {offsets = [0, 0], sizes = [1, 32], strides = [1, 1]} : vector<5x32xf32> to vector<1x32xf32>
    %13 = arith.addf %11, %12 : vector<1x32xf32>
    %14 = vector.shape_cast %13 : vector<1x32xf32> to vector<1x1x32xf32>
    %15 = vector.shape_cast %14 : vector<1x1x32xf32> to vector<1x1x32xf32>
    %16 = vector.broadcast %15 : vector<1x1x32xf32> to vector<2x1x32xf32>
    %c0_10 = arith.constant 0 : index
    %c0_11 = arith.constant 0 : index
    %c0_12 = arith.constant 0 : index
    %17 = vector.load %arg5[%c0_10, %c0_11, %c0_12] : memref<2x8x32xf32, #tpu.memory_space<vmem>>, vector<2x1x32xf32>
    tpu.vector_store %arg5[%c0_10, %c0_11, %c0_12], %16 {strides = array<i32>} : memref<2x8x32xf32, #tpu.memory_space<vmem>>, vector<2x1x32xf32>,
    %18 = vector.extract_strided_slice %10 {offsets = [1, 0], sizes = [4, 32], strides = [1, 1]} : vector<5x32xf32> to vector<4x32xf32>
    %19 = vector.shape_cast %18 : vector<4x32xf32> to vector<1x4x32xf32>
    %20 = vector.broadcast %19 : vector<1x4x32xf32> to vector<2x4x32xf32>
    %21 = arith.addf %9, %20 : vector<2x4x32xf32>
    %c0_13 = arith.constant 0 : index
    %c1 = arith.constant 1 : index
    %c0_14 = arith.constant 0 : index
    %22 = vector.load %arg5[%c0_13, %c1, %c0_14] : memref<2x8x32xf32, #tpu.memory_space<vmem>>, vector<2x4x32xf32>
    tpu.vector_store %arg5[%c0_13, %c1, %c0_14], %21 {strides = array<i32>} : memref<2x8x32xf32, #tpu.memory_space<vmem>>, vector<2x4x32xf32>,
    %cst_15 = arith.constant 0.000000e+00 : f32
    %23 = vector.broadcast %cst_15 : f32 to vector<2x3x32xf32>
    %c0_16 = arith.constant 0 : index
    %c5 = arith.constant 5 : index
    %c0_17 = arith.constant 0 : index
    %24 = vector.load %arg5[%c0_16, %c5, %c0_17] : memref<2x8x32xf32, #tpu.memory_space<vmem>>, vector<2x3x32xf32>
    tpu.vector_store %arg5[%c0_16, %c5, %c0_17], %23 {strides = array<i32>} : memref<2x8x32xf32, #tpu.memory_space<vmem>>, vector<2x3x32xf32>,
    return
  }
}

module attributes {stable_mosaic.version = 11 : i64} {
  func.func @transformer_kernel(%arg0: i32, %arg1: i32, %arg2: memref<1x8x32xf32, #tpu.memory_space<vmem>>, %arg3: memref<1x1x32xf32, #tpu.memory_space<vmem>>, %arg4: memref<1x1x32xf32, #tpu.memory_space<vmem>>, %arg5: memref<1x32x96xbf16, #tpu.memory_space<vmem>>, %arg6: memref<1x1x96xf32, #tpu.memory_space<vmem>>, %arg7: memref<1x32x32xbf16, #tpu.memory_space<vmem>>, %arg8: memref<1x1x32xf32, #tpu.memory_space<vmem>>, %arg9: memref<1x1x32xf32, #tpu.memory_space<vmem>>, %arg10: memref<1x1x32xf32, #tpu.memory_space<vmem>>, %arg11: memref<1x32x64xbf16, #tpu.memory_space<vmem>>, %arg12: memref<1x1x64xf32, #tpu.memory_space<vmem>>, %arg13: memref<1x64x32xbf16, #tpu.memory_space<vmem>>, %arg14: memref<1x1x32xf32, #tpu.memory_space<vmem>>, %arg15: memref<1x8x32xf32, #tpu.memory_space<vmem>>) attributes {dimension_semantics = [#tpu.dimension_semantics<parallel>, #tpu.dimension_semantics<arbitrary>], iteration_bounds = array<i64: 2, 2>, scalar_prefetch = 0 : i64, scratch_operands = 0 : i64, tpu.core_type = #tpu.core_type<tc>, window_params = [{transform_indices = @transform_0, window_bounds = array<i64: 1, 8, 32>}, {transform_indices = @transform_1, window_bounds = array<i64: 1, 1, 32>}, {transform_indices = @transform_2, window_bounds = array<i64: 1, 1, 32>}, {transform_indices = @transform_3, window_bounds = array<i64: 1, 32, 96>}, {transform_indices = @transform_4, window_bounds = array<i64: 1, 1, 96>}, {transform_indices = @transform_5, window_bounds = array<i64: 1, 32, 32>}, {transform_indices = @transform_6, window_bounds = array<i64: 1, 1, 32>}, {transform_indices = @transform_7, window_bounds = array<i64: 1, 1, 32>}, {transform_indices = @transform_8, window_bounds = array<i64: 1, 1, 32>}, {transform_indices = @transform_9, window_bounds = array<i64: 1, 32, 64>}, {transform_indices = @transform_10, window_bounds = array<i64: 1, 1, 64>}, {transform_indices = @transform_11, window_bounds = array<i64: 1, 64, 32>}, {transform_indices = @transform_12, window_bounds = array<i64: 1, 1, 32>}, {transform_indices = @transform_13, window_bounds = array<i64: 1, 8, 32>}]} {
    %c0_i32 = arith.constant 0 : i32
    %0 = arith.cmpi eq, %arg1, %c0_i32 : i32
    %1 = arith.extui %0 : i1 to i32
    %c0_i32_0 = arith.constant 0 : i32
    %2 = arith.cmpi ne, %1, %c0_i32_0 : i32
    scf.if %2 {
      %c0_76 = arith.constant 0 : index
      %c0_77 = arith.constant 0 : index
      %c0_78 = arith.constant 0 : index
      %202 = vector.load %arg2[%c0_76, %c0_77, %c0_78] : memref<1x8x32xf32, #tpu.memory_space<vmem>>, vector<1x8x32xf32>
      %c0_79 = arith.constant 0 : index
      %c0_80 = arith.constant 0 : index
      %c0_81 = arith.constant 0 : index
      %203 = vector.load %arg15[%c0_79, %c0_80, %c0_81] : memref<1x8x32xf32, #tpu.memory_space<vmem>>, vector<1x8x32xf32>
      tpu.vector_store %arg15[%c0_79, %c0_80, %c0_81], %202 {strides = array<i32>} : memref<1x8x32xf32, #tpu.memory_space<vmem>>, vector<1x8x32xf32>,
    } else {
    }
    %c0 = arith.constant 0 : index
    %c0_1 = arith.constant 0 : index
    %c0_2 = arith.constant 0 : index
    %3 = vector.load %arg15[%c0, %c0_1, %c0_2] : memref<1x8x32xf32, #tpu.memory_space<vmem>>, vector<1x8x32xf32>
    %4 = tpu.iota {dimensions = array<i32: 2>} : vector<1x1x8xi32>
    %c5_i32 = arith.constant 5 : i32
    %5 = vector.broadcast %c5_i32 : i32 to vector<1x1x8xi32>
    %6 = arith.cmpi slt, %4, %5 : vector<1x1x8xi32>
    %cst = arith.constant 0.000000e+00 : f32
    %cst_3 = arith.constant -1.000000e+30 : f32
    %7 = vector.broadcast %cst : f32 to vector<1x1x8xf32>
    %8 = vector.broadcast %cst_3 : f32 to vector<1x1x8xf32>
    %9 = arith.select %6, %7, %8 : vector<1x1x8xi1>, vector<1x1x8xf32>
    %c0_4 = arith.constant 0 : index
    %c0_5 = arith.constant 0 : index
    %c0_6 = arith.constant 0 : index
    %10 = vector.load %arg3[%c0_4, %c0_5, %c0_6] : memref<1x1x32xf32, #tpu.memory_space<vmem>>, vector<1x1x32xf32>
    %11 = vector.shape_cast %10 : vector<1x1x32xf32> to vector<1x32xf32>
    %c0_7 = arith.constant 0 : index
    %c0_8 = arith.constant 0 : index
    %c0_9 = arith.constant 0 : index
    %12 = vector.load %arg4[%c0_7, %c0_8, %c0_9] : memref<1x1x32xf32, #tpu.memory_space<vmem>>, vector<1x1x32xf32>
    %13 = vector.shape_cast %12 : vector<1x1x32xf32> to vector<1x32xf32>
    %cst_10 = arith.constant dense<0.000000e+00> : vector<1x8xf32>
    %14 = vector.multi_reduction <add>, %3, %cst_10 [2] : vector<1x8x32xf32> to vector<1x8xf32>
    %15 = vector.shape_cast %14 : vector<1x8xf32> to vector<1x8x1xf32>
    %cst_11 = arith.constant 3.200000e+01 : f32
    %16 = vector.broadcast %cst_11 : f32 to vector<1x8x1xf32>
    %17 = arith.divf %15, %16 : vector<1x8x1xf32>
    %18 = vector.broadcast %17 : vector<1x8x1xf32> to vector<1x8x32xf32>
    %19 = arith.subf %3, %18 : vector<1x8x32xf32>
    %20 = arith.mulf %19, %19 : vector<1x8x32xf32>
    %cst_12 = arith.constant dense<0.000000e+00> : vector<1x8xf32>
    %21 = vector.multi_reduction <add>, %20, %cst_12 [2] : vector<1x8x32xf32> to vector<1x8xf32>
    %22 = vector.shape_cast %21 : vector<1x8xf32> to vector<1x8x1xf32>
    %cst_13 = arith.constant 3.200000e+01 : f32
    %23 = vector.broadcast %cst_13 : f32 to vector<1x8x1xf32>
    %24 = arith.divf %22, %23 : vector<1x8x1xf32>
    %25 = vector.broadcast %17 : vector<1x8x1xf32> to vector<1x8x32xf32>
    %26 = arith.subf %3, %25 : vector<1x8x32xf32>
    %cst_14 = arith.constant 9.99999974E-6 : f32
    %27 = vector.broadcast %cst_14 : f32 to vector<1x8x1xf32>
    %28 = arith.addf %24, %27 : vector<1x8x1xf32>
    %29 = math.rsqrt %28 : vector<1x8x1xf32>
    %30 = vector.broadcast %29 : vector<1x8x1xf32> to vector<1x8x32xf32>
    %31 = arith.mulf %26, %30 : vector<1x8x32xf32>
    %32 = vector.shape_cast %11 : vector<1x32xf32> to vector<1x1x32xf32>
    %33 = vector.broadcast %32 : vector<1x1x32xf32> to vector<1x8x32xf32>
    %34 = arith.mulf %31, %33 : vector<1x8x32xf32>
    %35 = vector.shape_cast %13 : vector<1x32xf32> to vector<1x1x32xf32>
    %36 = vector.broadcast %35 : vector<1x1x32xf32> to vector<1x8x32xf32>
    %37 = arith.addf %34, %36 : vector<1x8x32xf32>
    %c0_15 = arith.constant 0 : index
    %c0_16 = arith.constant 0 : index
    %c0_17 = arith.constant 0 : index
    %38 = vector.load %arg5[%c0_15, %c0_16, %c0_17] : memref<1x32x96xbf16, #tpu.memory_space<vmem>>, vector<1x32x96xbf16>
    %39 = vector.shape_cast %38 : vector<1x32x96xbf16> to vector<32x96xbf16>
    %c0_18 = arith.constant 0 : index
    %c0_19 = arith.constant 0 : index
    %c0_20 = arith.constant 0 : index
    %40 = vector.load %arg6[%c0_18, %c0_19, %c0_20] : memref<1x1x96xf32, #tpu.memory_space<vmem>>, vector<1x1x96xf32>
    %41 = vector.shape_cast %40 : vector<1x1x96xf32> to vector<1x96xf32>
    %42 = vector.shape_cast %37 : vector<1x8x32xf32> to vector<8x32xf32>
    %43 = arith.truncf %42 : vector<8x32xf32> to vector<8x32xbf16>
    %cst_21 = arith.constant dense<0.000000e+00> : vector<8x96xf32>
    %44 = tpu.matmul %43, %39, %cst_21 {dimension_numbers = #tpu.dot_dimension_numbers<[1], [0], [0], [1], [0, 0, 1, 1], [], []>} : vector<8x32xbf16>, vector<32x96xbf16>, vector<8x96xf32> -> vector<8x96xf32>
    %45 = vector.broadcast %41 : vector<1x96xf32> to vector<8x96xf32>
    %46 = arith.addf %44, %45 : vector<8x96xf32>
    %47 = vector.shape_cast %46 : vector<8x96xf32> to vector<1x8x96xf32>
    %48 = vector.extract_strided_slice %47 {offsets = [0, 0, 0], sizes = [1, 8, 8], strides = [1, 1, 1]} : vector<1x8x96xf32> to vector<1x8x8xf32>
    %49 = arith.truncf %48 : vector<1x8x8xf32> to vector<1x8x8xbf16>
    %50 = vector.extract_strided_slice %47 {offsets = [0, 0, 32], sizes = [1, 8, 8], strides = [1, 1, 1]} : vector<1x8x96xf32> to vector<1x8x8xf32>
    %51 = arith.truncf %50 : vector<1x8x8xf32> to vector<1x8x8xbf16>
    %52 = vector.extract_strided_slice %47 {offsets = [0, 0, 64], sizes = [1, 8, 8], strides = [1, 1, 1]} : vector<1x8x96xf32> to vector<1x8x8xf32>
    %53 = arith.truncf %52 : vector<1x8x8xf32> to vector<1x8x8xbf16>
    "tpu.trace_start"() <{level = 10 : i32, message = "bqd,bkd->bqk"}> : () -> ()
    %cst_22 = arith.constant dense<0.000000e+00> : vector<1x8x8xf32>
    %54 = tpu.matmul %49, %51, %cst_22 {dimension_numbers = #tpu.dot_dimension_numbers<[2], [2], [1], [1], [0, 0, 0, 1, 1, 1], [0], [0]>} : vector<1x8x8xbf16>, vector<1x8x8xbf16>, vector<1x8x8xf32> -> vector<1x8x8xf32>
    "tpu.trace_stop"() : () -> ()
    %55 = vector.broadcast %9 : vector<1x1x8xf32> to vector<1x8x8xf32>
    %56 = arith.addf %54, %55 : vector<1x8x8xf32>
    %cst_23 = arith.constant dense<0xFF800000> : vector<1x8xf32>
    %57 = vector.multi_reduction <maximumf>, %56, %cst_23 [2] : vector<1x8x8xf32> to vector<1x8xf32>
    %58 = vector.shape_cast %57 : vector<1x8xf32> to vector<1x8x1xf32>
    %59 = vector.broadcast %58 : vector<1x8x1xf32> to vector<1x8x8xf32>
    %60 = arith.subf %56, %59 : vector<1x8x8xf32>
    %61 = math.exp %60 : vector<1x8x8xf32>
    %cst_24 = arith.constant dense<0.000000e+00> : vector<1x8xf32>
    %62 = vector.multi_reduction <add>, %61, %cst_24 [2] : vector<1x8x8xf32> to vector<1x8xf32>
    %63 = vector.shape_cast %62 : vector<1x8xf32> to vector<1x8x1xf32>
    %64 = tpu.reciprocal %63 {approx = true} : vector<1x8x1xf32> -> vector<1x8x1xf32>
    %65 = vector.broadcast %64 : vector<1x8x1xf32> to vector<1x8x8xf32>
    %66 = arith.mulf %61, %65 : vector<1x8x8xf32>
    %67 = arith.truncf %66 : vector<1x8x8xf32> to vector<1x8x8xbf16>
    "tpu.trace_start"() <{level = 10 : i32, message = "bqk,bkd->bqd"}> : () -> ()
    %cst_25 = arith.constant dense<0.000000e+00> : vector<1x8x8xf32>
    %68 = tpu.matmul %67, %53, %cst_25 {dimension_numbers = #tpu.dot_dimension_numbers<[2], [1], [1], [2], [0, 0, 0, 1, 1, 2], [0], [0]>} : vector<1x8x8xbf16>, vector<1x8x8xbf16>, vector<1x8x8xf32> -> vector<1x8x8xf32>
    "tpu.trace_stop"() : () -> ()
    %69 = vector.extract_strided_slice %47 {offsets = [0, 0, 8], sizes = [1, 8, 8], strides = [1, 1, 1]} : vector<1x8x96xf32> to vector<1x8x8xf32>
    %70 = arith.truncf %69 : vector<1x8x8xf32> to vector<1x8x8xbf16>
    %71 = vector.extract_strided_slice %47 {offsets = [0, 0, 40], sizes = [1, 8, 8], strides = [1, 1, 1]} : vector<1x8x96xf32> to vector<1x8x8xf32>
    %72 = arith.truncf %71 : vector<1x8x8xf32> to vector<1x8x8xbf16>
    %73 = vector.extract_strided_slice %47 {offsets = [0, 0, 72], sizes = [1, 8, 8], strides = [1, 1, 1]} : vector<1x8x96xf32> to vector<1x8x8xf32>
    %74 = arith.truncf %73 : vector<1x8x8xf32> to vector<1x8x8xbf16>
    "tpu.trace_start"() <{level = 10 : i32, message = "bqd,bkd->bqk"}> : () -> ()
    %cst_26 = arith.constant dense<0.000000e+00> : vector<1x8x8xf32>
    %75 = tpu.matmul %70, %72, %cst_26 {dimension_numbers = #tpu.dot_dimension_numbers<[2], [2], [1], [1], [0, 0, 0, 1, 1, 1], [0], [0]>} : vector<1x8x8xbf16>, vector<1x8x8xbf16>, vector<1x8x8xf32> -> vector<1x8x8xf32>
    "tpu.trace_stop"() : () -> ()
    %76 = vector.broadcast %9 : vector<1x1x8xf32> to vector<1x8x8xf32>
    %77 = arith.addf %75, %76 : vector<1x8x8xf32>
    %cst_27 = arith.constant dense<0xFF800000> : vector<1x8xf32>
    %78 = vector.multi_reduction <maximumf>, %77, %cst_27 [2] : vector<1x8x8xf32> to vector<1x8xf32>
    %79 = vector.shape_cast %78 : vector<1x8xf32> to vector<1x8x1xf32>
    %80 = vector.broadcast %79 : vector<1x8x1xf32> to vector<1x8x8xf32>
    %81 = arith.subf %77, %80 : vector<1x8x8xf32>
    %82 = math.exp %81 : vector<1x8x8xf32>
    %cst_28 = arith.constant dense<0.000000e+00> : vector<1x8xf32>
    %83 = vector.multi_reduction <add>, %82, %cst_28 [2] : vector<1x8x8xf32> to vector<1x8xf32>
    %84 = vector.shape_cast %83 : vector<1x8xf32> to vector<1x8x1xf32>
    %85 = tpu.reciprocal %84 {approx = true} : vector<1x8x1xf32> -> vector<1x8x1xf32>
    %86 = vector.broadcast %85 : vector<1x8x1xf32> to vector<1x8x8xf32>
    %87 = arith.mulf %82, %86 : vector<1x8x8xf32>
    %88 = arith.truncf %87 : vector<1x8x8xf32> to vector<1x8x8xbf16>
    "tpu.trace_start"() <{level = 10 : i32, message = "bqk,bkd->bqd"}> : () -> ()
    %cst_29 = arith.constant dense<0.000000e+00> : vector<1x8x8xf32>
    %89 = tpu.matmul %88, %74, %cst_29 {dimension_numbers = #tpu.dot_dimension_numbers<[2], [1], [1], [2], [0, 0, 0, 1, 1, 2], [0], [0]>} : vector<1x8x8xbf16>, vector<1x8x8xbf16>, vector<1x8x8xf32> -> vector<1x8x8xf32>
    "tpu.trace_stop"() : () -> ()
    %90 = vector.extract_strided_slice %47 {offsets = [0, 0, 16], sizes = [1, 8, 8], strides = [1, 1, 1]} : vector<1x8x96xf32> to vector<1x8x8xf32>
    %91 = arith.truncf %90 : vector<1x8x8xf32> to vector<1x8x8xbf16>
    %92 = vector.extract_strided_slice %47 {offsets = [0, 0, 48], sizes = [1, 8, 8], strides = [1, 1, 1]} : vector<1x8x96xf32> to vector<1x8x8xf32>
    %93 = arith.truncf %92 : vector<1x8x8xf32> to vector<1x8x8xbf16>
    %94 = vector.extract_strided_slice %47 {offsets = [0, 0, 80], sizes = [1, 8, 8], strides = [1, 1, 1]} : vector<1x8x96xf32> to vector<1x8x8xf32>
    %95 = arith.truncf %94 : vector<1x8x8xf32> to vector<1x8x8xbf16>
    "tpu.trace_start"() <{level = 10 : i32, message = "bqd,bkd->bqk"}> : () -> ()
    %cst_30 = arith.constant dense<0.000000e+00> : vector<1x8x8xf32>
    %96 = tpu.matmul %91, %93, %cst_30 {dimension_numbers = #tpu.dot_dimension_numbers<[2], [2], [1], [1], [0, 0, 0, 1, 1, 1], [0], [0]>} : vector<1x8x8xbf16>, vector<1x8x8xbf16>, vector<1x8x8xf32> -> vector<1x8x8xf32>
    "tpu.trace_stop"() : () -> ()
    %97 = vector.broadcast %9 : vector<1x1x8xf32> to vector<1x8x8xf32>
    %98 = arith.addf %96, %97 : vector<1x8x8xf32>
    %cst_31 = arith.constant dense<0xFF800000> : vector<1x8xf32>
    %99 = vector.multi_reduction <maximumf>, %98, %cst_31 [2] : vector<1x8x8xf32> to vector<1x8xf32>
    %100 = vector.shape_cast %99 : vector<1x8xf32> to vector<1x8x1xf32>
    %101 = vector.broadcast %100 : vector<1x8x1xf32> to vector<1x8x8xf32>
    %102 = arith.subf %98, %101 : vector<1x8x8xf32>
    %103 = math.exp %102 : vector<1x8x8xf32>
    %cst_32 = arith.constant dense<0.000000e+00> : vector<1x8xf32>
    %104 = vector.multi_reduction <add>, %103, %cst_32 [2] : vector<1x8x8xf32> to vector<1x8xf32>
    %105 = vector.shape_cast %104 : vector<1x8xf32> to vector<1x8x1xf32>
    %106 = tpu.reciprocal %105 {approx = true} : vector<1x8x1xf32> -> vector<1x8x1xf32>
    %107 = vector.broadcast %106 : vector<1x8x1xf32> to vector<1x8x8xf32>
    %108 = arith.mulf %103, %107 : vector<1x8x8xf32>
    %109 = arith.truncf %108 : vector<1x8x8xf32> to vector<1x8x8xbf16>
    "tpu.trace_start"() <{level = 10 : i32, message = "bqk,bkd->bqd"}> : () -> ()
    %cst_33 = arith.constant dense<0.000000e+00> : vector<1x8x8xf32>
    %110 = tpu.matmul %109, %95, %cst_33 {dimension_numbers = #tpu.dot_dimension_numbers<[2], [1], [1], [2], [0, 0, 0, 1, 1, 2], [0], [0]>} : vector<1x8x8xbf16>, vector<1x8x8xbf16>, vector<1x8x8xf32> -> vector<1x8x8xf32>
    "tpu.trace_stop"() : () -> ()
    %111 = vector.extract_strided_slice %47 {offsets = [0, 0, 24], sizes = [1, 8, 8], strides = [1, 1, 1]} : vector<1x8x96xf32> to vector<1x8x8xf32>
    %112 = arith.truncf %111 : vector<1x8x8xf32> to vector<1x8x8xbf16>
    %113 = vector.extract_strided_slice %47 {offsets = [0, 0, 56], sizes = [1, 8, 8], strides = [1, 1, 1]} : vector<1x8x96xf32> to vector<1x8x8xf32>
    %114 = arith.truncf %113 : vector<1x8x8xf32> to vector<1x8x8xbf16>
    %115 = vector.extract_strided_slice %47 {offsets = [0, 0, 88], sizes = [1, 8, 8], strides = [1, 1, 1]} : vector<1x8x96xf32> to vector<1x8x8xf32>
    %116 = arith.truncf %115 : vector<1x8x8xf32> to vector<1x8x8xbf16>
    "tpu.trace_start"() <{level = 10 : i32, message = "bqd,bkd->bqk"}> : () -> ()
    %cst_34 = arith.constant dense<0.000000e+00> : vector<1x8x8xf32>
    %117 = tpu.matmul %112, %114, %cst_34 {dimension_numbers = #tpu.dot_dimension_numbers<[2], [2], [1], [1], [0, 0, 0, 1, 1, 1], [0], [0]>} : vector<1x8x8xbf16>, vector<1x8x8xbf16>, vector<1x8x8xf32> -> vector<1x8x8xf32>
    "tpu.trace_stop"() : () -> ()
    %118 = vector.broadcast %9 : vector<1x1x8xf32> to vector<1x8x8xf32>
    %119 = arith.addf %117, %118 : vector<1x8x8xf32>
    %cst_35 = arith.constant dense<0xFF800000> : vector<1x8xf32>
    %120 = vector.multi_reduction <maximumf>, %119, %cst_35 [2] : vector<1x8x8xf32> to vector<1x8xf32>
    %121 = vector.shape_cast %120 : vector<1x8xf32> to vector<1x8x1xf32>
    %122 = vector.broadcast %121 : vector<1x8x1xf32> to vector<1x8x8xf32>
    %123 = arith.subf %119, %122 : vector<1x8x8xf32>
    %124 = math.exp %123 : vector<1x8x8xf32>
    %cst_36 = arith.constant dense<0.000000e+00> : vector<1x8xf32>
    %125 = vector.multi_reduction <add>, %124, %cst_36 [2] : vector<1x8x8xf32> to vector<1x8xf32>
    %126 = vector.shape_cast %125 : vector<1x8xf32> to vector<1x8x1xf32>
    %127 = tpu.reciprocal %126 {approx = true} : vector<1x8x1xf32> -> vector<1x8x1xf32>
    %128 = vector.broadcast %127 : vector<1x8x1xf32> to vector<1x8x8xf32>
    %129 = arith.mulf %124, %128 : vector<1x8x8xf32>
    %130 = arith.truncf %129 : vector<1x8x8xf32> to vector<1x8x8xbf16>
    "tpu.trace_start"() <{level = 10 : i32, message = "bqk,bkd->bqd"}> : () -> ()
    %cst_37 = arith.constant dense<0.000000e+00> : vector<1x8x8xf32>
    %131 = tpu.matmul %130, %116, %cst_37 {dimension_numbers = #tpu.dot_dimension_numbers<[2], [1], [1], [2], [0, 0, 0, 1, 1, 2], [0], [0]>} : vector<1x8x8xbf16>, vector<1x8x8xbf16>, vector<1x8x8xf32> -> vector<1x8x8xf32>
    "tpu.trace_stop"() : () -> ()
    %132 = tpu.concatenate %68, %89, %110, %131 in 2 : vector<1x8x8xf32>, vector<1x8x8xf32>, vector<1x8x8xf32>, vector<1x8x8xf32> -> vector<1x8x32xf32>
    %c0_38 = arith.constant 0 : index
    %c0_39 = arith.constant 0 : index
    %c0_40 = arith.constant 0 : index
    %133 = vector.load %arg7[%c0_38, %c0_39, %c0_40] : memref<1x32x32xbf16, #tpu.memory_space<vmem>>, vector<1x32x32xbf16>
    %134 = vector.shape_cast %133 : vector<1x32x32xbf16> to vector<32x32xbf16>
    %c0_41 = arith.constant 0 : index
    %c0_42 = arith.constant 0 : index
    %c0_43 = arith.constant 0 : index
    %135 = vector.load %arg8[%c0_41, %c0_42, %c0_43] : memref<1x1x32xf32, #tpu.memory_space<vmem>>, vector<1x1x32xf32>
    %136 = vector.shape_cast %135 : vector<1x1x32xf32> to vector<1x32xf32>
    %137 = vector.shape_cast %132 : vector<1x8x32xf32> to vector<8x32xf32>
    %138 = arith.truncf %137 : vector<8x32xf32> to vector<8x32xbf16>
    %cst_44 = arith.constant dense<0.000000e+00> : vector<8x32xf32>
    %139 = tpu.matmul %138, %134, %cst_44 {dimension_numbers = #tpu.dot_dimension_numbers<[1], [0], [0], [1], [0, 0, 1, 1], [], []>} : vector<8x32xbf16>, vector<32x32xbf16>, vector<8x32xf32> -> vector<8x32xf32>
    %140 = vector.broadcast %136 : vector<1x32xf32> to vector<8x32xf32>
    %141 = arith.addf %139, %140 : vector<8x32xf32>
    %142 = vector.shape_cast %141 : vector<8x32xf32> to vector<1x8x32xf32>
    %143 = arith.addf %3, %142 : vector<1x8x32xf32>
    %c0_45 = arith.constant 0 : index
    %c0_46 = arith.constant 0 : index
    %c0_47 = arith.constant 0 : index
    %144 = vector.load %arg9[%c0_45, %c0_46, %c0_47] : memref<1x1x32xf32, #tpu.memory_space<vmem>>, vector<1x1x32xf32>
    %145 = vector.shape_cast %144 : vector<1x1x32xf32> to vector<1x32xf32>
    %c0_48 = arith.constant 0 : index
    %c0_49 = arith.constant 0 : index
    %c0_50 = arith.constant 0 : index
    %146 = vector.load %arg10[%c0_48, %c0_49, %c0_50] : memref<1x1x32xf32, #tpu.memory_space<vmem>>, vector<1x1x32xf32>
    %147 = vector.shape_cast %146 : vector<1x1x32xf32> to vector<1x32xf32>
    %cst_51 = arith.constant dense<0.000000e+00> : vector<1x8xf32>
    %148 = vector.multi_reduction <add>, %143, %cst_51 [2] : vector<1x8x32xf32> to vector<1x8xf32>
    %149 = vector.shape_cast %148 : vector<1x8xf32> to vector<1x8x1xf32>
    %cst_52 = arith.constant 3.200000e+01 : f32
    %150 = vector.broadcast %cst_52 : f32 to vector<1x8x1xf32>
    %151 = arith.divf %149, %150 : vector<1x8x1xf32>
    %152 = vector.broadcast %151 : vector<1x8x1xf32> to vector<1x8x32xf32>
    %153 = arith.subf %143, %152 : vector<1x8x32xf32>
    %154 = arith.mulf %153, %153 : vector<1x8x32xf32>
    %cst_53 = arith.constant dense<0.000000e+00> : vector<1x8xf32>
    %155 = vector.multi_reduction <add>, %154, %cst_53 [2] : vector<1x8x32xf32> to vector<1x8xf32>
    %156 = vector.shape_cast %155 : vector<1x8xf32> to vector<1x8x1xf32>
    %cst_54 = arith.constant 3.200000e+01 : f32
    %157 = vector.broadcast %cst_54 : f32 to vector<1x8x1xf32>
    %158 = arith.divf %156, %157 : vector<1x8x1xf32>
    %159 = vector.broadcast %151 : vector<1x8x1xf32> to vector<1x8x32xf32>
    %160 = arith.subf %143, %159 : vector<1x8x32xf32>
    %cst_55 = arith.constant 9.99999974E-6 : f32
    %161 = vector.broadcast %cst_55 : f32 to vector<1x8x1xf32>
    %162 = arith.addf %158, %161 : vector<1x8x1xf32>
    %163 = math.rsqrt %162 : vector<1x8x1xf32>
    %164 = vector.broadcast %163 : vector<1x8x1xf32> to vector<1x8x32xf32>
    %165 = arith.mulf %160, %164 : vector<1x8x32xf32>
    %166 = vector.shape_cast %145 : vector<1x32xf32> to vector<1x1x32xf32>
    %167 = vector.broadcast %166 : vector<1x1x32xf32> to vector<1x8x32xf32>
    %168 = arith.mulf %165, %167 : vector<1x8x32xf32>
    %169 = vector.shape_cast %147 : vector<1x32xf32> to vector<1x1x32xf32>
    %170 = vector.broadcast %169 : vector<1x1x32xf32> to vector<1x8x32xf32>
    %171 = arith.addf %168, %170 : vector<1x8x32xf32>
    %c0_56 = arith.constant 0 : index
    %c0_57 = arith.constant 0 : index
    %c0_58 = arith.constant 0 : index
    %172 = vector.load %arg11[%c0_56, %c0_57, %c0_58] : memref<1x32x64xbf16, #tpu.memory_space<vmem>>, vector<1x32x64xbf16>
    %173 = vector.shape_cast %172 : vector<1x32x64xbf16> to vector<32x64xbf16>
    %c0_59 = arith.constant 0 : index
    %c0_60 = arith.constant 0 : index
    %c0_61 = arith.constant 0 : index
    %174 = vector.load %arg12[%c0_59, %c0_60, %c0_61] : memref<1x1x64xf32, #tpu.memory_space<vmem>>, vector<1x1x64xf32>
    %175 = vector.shape_cast %174 : vector<1x1x64xf32> to vector<1x64xf32>
    %176 = vector.shape_cast %171 : vector<1x8x32xf32> to vector<8x32xf32>
    %177 = arith.truncf %176 : vector<8x32xf32> to vector<8x32xbf16>
    %cst_62 = arith.constant dense<0.000000e+00> : vector<8x64xf32>
    %178 = tpu.matmul %177, %173, %cst_62 {dimension_numbers = #tpu.dot_dimension_numbers<[1], [0], [0], [1], [0, 0, 1, 1], [], []>} : vector<8x32xbf16>, vector<32x64xbf16>, vector<8x64xf32> -> vector<8x64xf32>
    %179 = vector.broadcast %175 : vector<1x64xf32> to vector<8x64xf32>
    %180 = arith.addf %178, %179 : vector<8x64xf32>
    %181 = vector.shape_cast %180 : vector<8x64xf32> to vector<1x8x64xf32>
    %cst_63 = arith.constant 5.000000e-01 : f32
    %182 = vector.broadcast %cst_63 : f32 to vector<1x8x64xf32>
    %183 = arith.mulf %182, %181 : vector<1x8x64xf32>
    %cst_64 = arith.constant 0.707106769 : f32
    %184 = vector.broadcast %cst_64 : f32 to vector<1x8x64xf32>
    %185 = arith.mulf %181, %184 : vector<1x8x64xf32>
    %186 = math.erf %185 : vector<1x8x64xf32>
    %cst_65 = arith.constant 1.000000e+00 : f32
    %187 = vector.broadcast %cst_65 : f32 to vector<1x8x64xf32>
    %188 = arith.addf %187, %186 : vector<1x8x64xf32>
    %189 = arith.mulf %183, %188 : vector<1x8x64xf32>
    %c0_66 = arith.constant 0 : index
    %c0_67 = arith.constant 0 : index
    %c0_68 = arith.constant 0 : index
    %190 = vector.load %arg13[%c0_66, %c0_67, %c0_68] : memref<1x64x32xbf16, #tpu.memory_space<vmem>>, vector<1x64x32xbf16>
    %191 = vector.shape_cast %190 : vector<1x64x32xbf16> to vector<64x32xbf16>
    %c0_69 = arith.constant 0 : index
    %c0_70 = arith.constant 0 : index
    %c0_71 = arith.constant 0 : index
    %192 = vector.load %arg14[%c0_69, %c0_70, %c0_71] : memref<1x1x32xf32, #tpu.memory_space<vmem>>, vector<1x1x32xf32>
    %193 = vector.shape_cast %192 : vector<1x1x32xf32> to vector<1x32xf32>
    %194 = vector.shape_cast %189 : vector<1x8x64xf32> to vector<8x64xf32>
    %195 = arith.truncf %194 : vector<8x64xf32> to vector<8x64xbf16>
    %cst_72 = arith.constant dense<0.000000e+00> : vector<8x32xf32>
    %196 = tpu.matmul %195, %191, %cst_72 {dimension_numbers = #tpu.dot_dimension_numbers<[1], [0], [0], [1], [0, 0, 1, 1], [], []>} : vector<8x64xbf16>, vector<64x32xbf16>, vector<8x32xf32> -> vector<8x32xf32>
    %197 = vector.broadcast %193 : vector<1x32xf32> to vector<8x32xf32>
    %198 = arith.addf %196, %197 : vector<8x32xf32>
    %199 = vector.shape_cast %198 : vector<8x32xf32> to vector<1x8x32xf32>
    %200 = arith.addf %143, %199 : vector<1x8x32xf32>
    %c0_73 = arith.constant 0 : index
    %c0_74 = arith.constant 0 : index
    %c0_75 = arith.constant 0 : index
    %201 = vector.load %arg15[%c0_73, %c0_74, %c0_75] : memref<1x8x32xf32, #tpu.memory_space<vmem>>, vector<1x8x32xf32>
    tpu.vector_store %arg15[%c0_73, %c0_74, %c0_75], %200 {strides = array<i32>} : memref<1x8x32xf32, #tpu.memory_space<vmem>>, vector<1x8x32xf32>,
    return
  }
  func.func @transform_0(%arg0: i32, %arg1: i32) -> (i32, i32, i32) {
    %c0_i32 = arith.constant 0 : i32
    %c0_i32_0 = arith.constant 0 : i32
    %c0_i32_1 = arith.constant 0 : i32
    return %arg0, %c0_i32, %c0_i32_0 : i32, i32, i32
  }
  func.func @transform_1(%arg0: i32, %arg1: i32) -> (i32, i32, i32) {
    %c0_i32 = arith.constant 0 : i32
    %c0_i32_0 = arith.constant 0 : i32
    %c0_i32_1 = arith.constant 0 : i32
    return %arg1, %c0_i32, %c0_i32_0 : i32, i32, i32
  }
  func.func @transform_2(%arg0: i32, %arg1: i32) -> (i32, i32, i32) {
    %c0_i32 = arith.constant 0 : i32
    %c0_i32_0 = arith.constant 0 : i32
    %c0_i32_1 = arith.constant 0 : i32
    return %arg1, %c0_i32, %c0_i32_0 : i32, i32, i32
  }
  func.func @transform_3(%arg0: i32, %arg1: i32) -> (i32, i32, i32) {
    %c0_i32 = arith.constant 0 : i32
    %c0_i32_0 = arith.constant 0 : i32
    %c0_i32_1 = arith.constant 0 : i32
    return %arg1, %c0_i32, %c0_i32_0 : i32, i32, i32
  }
  func.func @transform_4(%arg0: i32, %arg1: i32) -> (i32, i32, i32) {
    %c0_i32 = arith.constant 0 : i32
    %c0_i32_0 = arith.constant 0 : i32
    %c0_i32_1 = arith.constant 0 : i32
    return %arg1, %c0_i32, %c0_i32_0 : i32, i32, i32
  }
  func.func @transform_5(%arg0: i32, %arg1: i32) -> (i32, i32, i32) {
    %c0_i32 = arith.constant 0 : i32
    %c0_i32_0 = arith.constant 0 : i32
    %c0_i32_1 = arith.constant 0 : i32
    return %arg1, %c0_i32, %c0_i32_0 : i32, i32, i32
  }
  func.func @transform_6(%arg0: i32, %arg1: i32) -> (i32, i32, i32) {
    %c0_i32 = arith.constant 0 : i32
    %c0_i32_0 = arith.constant 0 : i32
    %c0_i32_1 = arith.constant 0 : i32
    return %arg1, %c0_i32, %c0_i32_0 : i32, i32, i32
  }
  func.func @transform_7(%arg0: i32, %arg1: i32) -> (i32, i32, i32) {
    %c0_i32 = arith.constant 0 : i32
    %c0_i32_0 = arith.constant 0 : i32
    %c0_i32_1 = arith.constant 0 : i32
    return %arg1, %c0_i32, %c0_i32_0 : i32, i32, i32
  }
  func.func @transform_8(%arg0: i32, %arg1: i32) -> (i32, i32, i32) {
    %c0_i32 = arith.constant 0 : i32
    %c0_i32_0 = arith.constant 0 : i32
    %c0_i32_1 = arith.constant 0 : i32
    return %arg1, %c0_i32, %c0_i32_0 : i32, i32, i32
  }
  func.func @transform_9(%arg0: i32, %arg1: i32) -> (i32, i32, i32) {
    %c0_i32 = arith.constant 0 : i32
    %c0_i32_0 = arith.constant 0 : i32
    %c0_i32_1 = arith.constant 0 : i32
    return %arg1, %c0_i32, %c0_i32_0 : i32, i32, i32
  }
  func.func @transform_10(%arg0: i32, %arg1: i32) -> (i32, i32, i32) {
    %c0_i32 = arith.constant 0 : i32
    %c0_i32_0 = arith.constant 0 : i32
    %c0_i32_1 = arith.constant 0 : i32
    return %arg1, %c0_i32, %c0_i32_0 : i32, i32, i32
  }
  func.func @transform_11(%arg0: i32, %arg1: i32) -> (i32, i32, i32) {
    %c0_i32 = arith.constant 0 : i32
    %c0_i32_0 = arith.constant 0 : i32
    %c0_i32_1 = arith.constant 0 : i32
    return %arg1, %c0_i32, %c0_i32_0 : i32, i32, i32
  }
  func.func @transform_12(%arg0: i32, %arg1: i32) -> (i32, i32, i32) {
    %c0_i32 = arith.constant 0 : i32
    %c0_i32_0 = arith.constant 0 : i32
    %c0_i32_1 = arith.constant 0 : i32
    return %arg1, %c0_i32, %c0_i32_0 : i32, i32, i32
  }
  func.func @transform_13(%arg0: i32, %arg1: i32) -> (i32, i32, i32) {
    %c0_i32 = arith.constant 0 : i32
    %c0_i32_0 = arith.constant 0 : i32
    %c0_i32_1 = arith.constant 0 : i32
    return %arg0, %c0_i32, %c0_i32_0 : i32, i32, i32
  }
}

</mosaic_0001>

<bundles_post_ra>
// kernel: _lambda_.2
= control target key start
LH: loop header
LB: loop body
LE: loop exit
PB: predicated region body
PF: predicated region fallthrough
CT: control target
= control target key end

     0   :  { %vm199_vm0 = vcmask 253952   ;;  %vm217_vm1 = vcmask 256000   ;;  %v308_v25 = vmov 0.0   ;;  %vm214_vm2 = vcmask 257024   ;;  %s420_s1 = inlined_call_operand.vmem [shape: bf16[256,32], index: 1, kind: input, shape index: {}]   ;;  %s421_s0 = inlined_call_operand.vmem [shape: f32[2,4,256], index: 0, kind: input, shape index: {}]   ;;  %s422_s2 = inlined_call_operand.vmem [shape: f32[1,32], index: 2, kind: input, shape index: {}]   ;;  %s423_s3 = inlined_call_operand.vmem [shape: f32[1,32], index: 3, kind: input, shape index: {}]   ;;  %s424_s4 = inlined_call_operand.vmem [shape: f32[5,32], index: 4, kind: input, shape index: {}]   ;;  %s425_s5 = inlined_call_operand.vmem [shape: f32[2,8,32], index: 5, kind: output, shape index: {}]  }
   0x1   :  { %v297_v0 = vld [vmem:[%s420_s1 + $0x38] sm:$0xff]  ;;  %v296_v2 = vld [vmem:[%s420_s1 + $0x30] sm:$0xff]  ;;  %v52_v4 = vld [vmem:[%s421_s0] sm:$0xff]  ;;  %218 = vst.msk [vmem:[%s425_s5 + $0x5] sm:$0x7] %vm217_vm1, %v308_v25 }
   0x2   :  { %v305_v1 = vld [vmem:[%s420_s1 + $0x78] sm:$0xff]  ;;  %161 = vmatpush.bf16.msra.mxu0 %v297_v0  ;;  %v304_v3 = vld [vmem:[%s420_s1 + $0x70] sm:$0xff]  ;;  %v53_v5 = vld [vmem:[%s421_s0 + $0x8] sm:$0xff]  ;;  %56 = vst [vmem:[#allocation1] ss:$2 sm:$0xff] %v52_v4 }
   0x3   :  { %174 = vmatpush.bf16.msra.mxu1 %v305_v1  ;;  %v295_v6 = vld [vmem:[%s420_s1 + $0x28] sm:$0xff]  ;;  %58 = vst [vmem:[#allocation1 + $0x1] ss:$2 sm:$0xff] %v53_v5  ;;  %v294_v8 = vld [vmem:[%s420_s1 + $0x20] sm:$0xff]  ;;  %v293_v10 = vld [vmem:[%s420_s1 + $0x18] sm:$0xff] }
   0x4   :  { %v303_v7 = vld [vmem:[%s420_s1 + $0x68] sm:$0xff]  ;;  %v302_v9 = vld [vmem:[%s420_s1 + $0x60] sm:$0xff]  ;;  %v301_v11 = vld [vmem:[%s420_s1 + $0x58] sm:$0xff]  ;;  %219 = vst.msk [vmem:[%s425_s5 + $0xd] sm:$0x7] %vm217_vm1, %v308_v25 }
   0x5   :  { %v292_v12 = vld [vmem:[%s420_s1 + $0x10] sm:$0xff]  ;;  %v291_v14 = vld [vmem:[%s420_s1 + $0x8] sm:$0xff]  ;;  %v290_v16 = vld [vmem:[%s420_s1] sm:$0xff] }
   0x6   :  { %162 = vmatpush.bf16.msra.mxu0 %v296_v2  ;;  %v300_v13 = vld [vmem:[%s420_s1 + $0x50] sm:$0xff]  ;;  %v299_v15 = vld [vmem:[%s420_s1 + $0x48] sm:$0xff]  ;;  %v298_v17 = vld [vmem:[%s420_s1 + $0x40] sm:$0xff] }
   0x7   :  { %175 = vmatpush.bf16.msra.mxu1 %v304_v3  ;;  %v196_v22 = vld [vmem:[%s424_s4] sm:$0x1f] }
   0x8   :  { %v197_v23 = vld [vmem:[%s423_s3] sm:$0x1]  ;;  %v288_v30 = vrot.slane %v196_v22, 9 }
   0x9   :  { %v198_v24 = vadd.f32 %v197_v23, %v196_v22  ;;  %v307_v26 = vld [vmem:[%s422_s2] ss:$0 sm:$0xff] }
   0xa   :  { %163 = vmatpush.bf16.msra.mxu0 %v295_v6  ;;  %v59_v18 = vld.sshfl [vmem:[#allocation1] sm:$0xff pattern:$0x75316420]  ;;  %v60_v19 = vld.sshfl [vmem:[#allocation1 + $0x8] sm:$0xff pattern:$0x75316420] }
   0xb   :  { %176 = vmatpush.bf16.msra.mxu1 %v303_v7  ;;  %v63_v20 = vpack.c.bf16 %v59_v18, %v59_v18  ;;  %v64_v21 = vpack.c.bf16 %v60_v19, %v60_v19  ;;  %200 = vst.msk [vmem:[%s425_s5] sm:$0x1] %vm199_vm0, %v198_v24 }
   0xc   :  { %201 = vst.msk [vmem:[%s425_s5 + $0x8] sm:$0x1] %vm199_vm0, %v198_v24 }
   0xe   :  { %164 = vmatpush.bf16.msra.mxu0 %v294_v8 }
   0xf   :  { %177 = vmatpush.bf16.msra.mxu1 %v302_v9 }
  0x12   :  { %165 = vmatpush.bf16.msra.mxu0 %v293_v10 }
  0x13   :  { %178 = vmatpush.bf16.msra.mxu1 %v301_v11 }
  0x16   :  { %166 = vmatpush.bf16.msra.mxu0 %v292_v12 }
  0x17   :  { %179 = vmatpush.bf16.msra.mxu1 %v300_v13 }
  0x1a   :  { %167 = vmatpush.bf16.msra.mxu0 %v291_v14 }
  0x1b   :  { %180 = vmatpush.bf16.msra.mxu1 %v299_v15 }
  0x1e   :  { %168 = vmatpush.bf16.msra.mxu0 %v290_v16 }
  0x1f   :  { %181 = vmatpush.bf16.msra.mxu1 %v298_v17 }
  0x21   :  { %169 = vmatmul.bf16.vlgmr.msra.gmra.mxu0 %v63_v20 }
  0x22   :  { %182 = vmatmul.bf16.vlgmr.msra.gmra.mxu1 %v64_v21 }
  0x9e   :  { %v170_v27 = vpop.f32.mrf.mxu0 }
  0x9f   :  { %v183_v28 = vpop.f32.mrf.mxu1 }
  0xa0   :  { %v184_v29 = vadd.f32 %v183_v28, %v170_v27 }
  0xa2   :  { %v188_v31 = vrot.slane %v184_v29, 4  ;;  %v194_v32 = vadd.f32 %v307_v26, %v184_v29 }
  0xa4   :  { %v195_v33 = vadd.f32 %v307_v26, %v188_v31  ;;  %v212_v34 = vadd.f32 %v288_v30, %v194_v32 }
  0xa6   :  { %v213_v35 = vadd.f32 %v288_v30, %v195_v33  ;;  %215 = vst.msk [vmem:[%s425_s5 + $0x1] sm:$0xf] %vm214_vm2, %v212_v34  ;;  %v172_v36 = vpop.f32.mrf.mxu0 }
  0xa7   :  { %v185_v37 = vpop.f32.mrf.mxu1 }
  0xa8   :  { %216 = vst.msk [vmem:[%s425_s5 + $0x9] sm:$0xf] %vm214_vm2, %v213_v35 }

// kernel: _lambda_.3
= control target key start
LH: loop header
LB: loop body
LE: loop exit
PB: predicated region body
PF: predicated region fallthrough
CT: control target
= control target key end

     0   :  { %s1665_s25 = smov 0   ;;  %s1667_s26 = smov 0   ;;  %s1894_s0 = inlined_call_operand.vmem [shape: f32[2,8,32], index: 0, kind: input, shape index: {}, may-alias: {0,13}]   ;;  %s1895_s1 = inlined_call_operand.vmem [shape: f32[2,1,32], index: 1, kind: input, shape index: {}, may-alias: {1,7}]   ;;  %s1896_s2 = inlined_call_operand.vmem [shape: f32[2,1,32], index: 2, kind: input, shape index: {}, may-alias: {2,8}]   ;;  %s1897_s3 = inlined_call_operand.vmem [shape: bf16[2,32,96], index: 3, kind: input, shape index: {}]   ;;  %s1898_s4 = inlined_call_operand.vmem [shape: f32[2,1,96], index: 4, kind: input, shape index: {}]   ;;  %s1899_s5 = inlined_call_operand.vmem [shape: bf16[2,32,32], index: 5, kind: input, shape index: {}]   ;;  %s1900_s6 = inlined_call_operand.vmem [shape: f32[2,1,32], index: 6, kind: input, shape index: {}]   ;;  %s1901_s7 = inlined_call_operand.vmem [shape: f32[2,1,32], index: 7, kind: input, shape index: {}, may-alias: {1,7}]   ;;  %s1902_s8 = inlined_call_operand.vmem [shape: f32[2,1,32], index: 8, kind: input, shape index: {}, may-alias: {2,8}]   ;;  %s1903_s9 = inlined_call_operand.vmem [shape: bf16[2,32,64], index: 9, kind: input, shape index: {}]   ;;  %s1904_s10 = inlined_call_operand.vmem [shape: f32[2,1,64], index: 10, kind: input, shape index: {}]   ;;  %s1905_s11 = inlined_call_operand.vmem [shape: bf16[2,64,32], index: 11, kind: input, shape index: {}]   ;;  %s1906_s12 = inlined_call_operand.vmem [shape: f32[2,1,32], index: 12, kind: input, shape index: {}]   ;;  %s1907_s13 = inlined_call_operand.vmem [shape: f32[2,8,32], index: 13, kind: output, shape index: {}, may-alias: {0,13}]  }
   0x1   :  { %1912 = sst [smem:[#allocation8_spill]] %s1894_s0  ;;  %s1669_s27 = smov 0  }
   0x2   :  { %1913 = sst [smem:[#allocation9_spill]] %s1896_s2  ;;  %s1671_s28 = smov 0  }
   0x3   :  { %1914 = sst [smem:[#allocation10_spill]] %s1897_s3  ;;  %s1673_s29 = smov 0  }
   0x4   :  { %1915 = sst [smem:[#allocation11_spill]] %s1899_s5 }
   0x5   :  { %1916 = sst [smem:[#allocation12_spill]] %s1907_s13 }
   0x6 LB: > { %1917 = sst [smem:[#allocation2_spill]] %s1561_s25  ;;  %s32_s30 = sadd.s32 1, %s1569_s27  ;;  %s1577_s29 = sphi %s1673_s29, %s23_s29   ;;  %s1573_s28 = sphi %s1671_s28, %s1940_s28   ;;  %s1569_s27 = sphi %s1669_s27, %s1939_s27   ;;  %s1565_s26 = sphi %s1667_s26, %s1938_s26   ;;  %s1561_s25 = sphi %s1665_s25, %s1937_s25  }
   0x7   : > { %1918 = sst [smem:[#allocation3_spill]] %s1569_s27  ;;  %s35_s14 = sadd.s32 1, %s1573_s28 }
   0x8   : > { %1919 = sst [smem:[#allocation4_spill]] %s1573_s28  ;;  %p33_p0 = scmp.ge.s32.totalorder %s32_s30, 2 }
   0x9   : > { %1920 = sst [smem:[#allocation5_spill]] %s1577_s29  ;;  %p1370_p1 = scmp.ge.s32.totalorder %s1577_s29, 1 }
   0xa   : > { %p502_p2 = scmp.lt.s32.totalorder %s1577_s29, 5  ;;  %s1942_s30 = smov (%p33_p0, %s32_s30), 0 }
   0xb   : > { %1921 = sst [smem:[#allocation6_spill]] %s1942_s30  ;;  %s1944_s14 = smov (!%p33_p0, %s35_s14), %s1573_s28 }
   0xc   : > { %p503_p3 = pnand %p1370_p1, %p502_p2  ;;  %p37_p4 = scmp.ge.s32.totalorder %s1944_s14, 2 }
   0xd   : > { %p588_p5 = scmp.lt.s32.totalorder (!%p503_p3), %s1565_s26, 1  ;;  %p592_p6 = scmp.lt.s32.totalorder (!%p503_p3), %s1561_s25, 1 }
   0xe   : > { %s1946_s14 = smov (%p37_p4, %s1944_s14), 0  ;;  %506 = sbr.rel (%p503_p3) target bundleno = 1964 (0x7ac), region = 72 }
   0xf   : > { %1922 = sst [smem:[#allocation7_spill]] %s1946_s14 }
  0x10   : > { %s1923_s0 = sld [smem:[#allocation8_spill]] (!%p503_p3) }
  0x11   : > { %s1925_s3 = sld [smem:[#allocation10_spill]] (!%p503_p3) }
  0x12   : > { %s1926_s5 = sld [smem:[#allocation11_spill]] (!%p503_p3) }
  0x13   : > { %s1948_s26 = smov (!%p588_p5, %s1565_s26), 1 }
  0x14   : > { %s1699_s15 = scalar_select %p592_p6, %s1561_s25, 1 }
  0x15   : > { %s1371_s16 = sshll.u32 %s1948_s26, 3 }
  0x16   : > { %s591_s19 = scalar_lea.vmem %s1923_s0, %s1371_s16  ;;  %s1437_s30 = sshll.u32 %s1699_s15, 4 }
  0x17   : > { %s1716_s29 = scalar_lea.vmem %s1925_s3, %s1437_s30  ;;  %s1742_s26 = scalar_lea.vmem %s1903_s9, %s1437_s30 }
  0x18   : > { %s1725_s0 = scalar_lea.vmem %s1926_s5, %s1437_s30  ;;  %s627_s13 = scalar_lea.vmem %s1904_s10, %s1699_s15 }
  0x19   : > { %s1440_s5 = sshll.u32 %s1699_s15, 5  ;;  %s635_s23 = scalar_lea.vmem %s1906_s12, %s1699_s15 }
  0x1a   : > { %s1756_s22 = scalar_lea.vmem %s1905_s11, %s1440_s5  ;;  %s1927_s3 = sld [smem:[#allocation12_spill]] }
  0x1b   : > { %s1928_s30 = sld [smem:[#allocation2_spill]] }
  0x20   : > { %s1761_s2 = scalar_lea.vmem %s1927_s3, %s1371_s16 }
  0x21   : > { %p1381_p7 = scmp.ne.s32.totalorder %s1928_s30, 0 }
  0x23   : > { %644 = sbr.rel (%p1381_p7) target bundleno = 42 (0x2a), region = 76 }
  0x28   : > { %v645_v0 = vld [vmem:[%s591_s19] sm:$0xff]  ;;  %vm646_vm0 = vcmask 261120  }
  0x29   : > { %647 = vst.msk [vmem:[%s1761_s2] sm:$0xff] %vm646_vm0, %v645_v0 }
  0x2a PF: > { %vm655_vm1 = vcmask 261120   ;;  %v1579_v3 = vmov 32.0   ;;  %v1442_v15 = vld [vmem:[%s1716_s29 + $0x8] sm:$0xff]  ;;  %v1441_v16 = vld [vmem:[%s1716_s29] sm:$0xff]  ;;  %s1929_s29 = scalar_lea.vmem %s1895_s1, %s1699_s15  ;;  %s1930_s25 = sld [smem:[#allocation9_spill]]  ;;  %vm736_vm6 = vcmask 64512   ;;  %v649_v51 = vlaneseq }
  0x2b   : > { %1515 = vrcp.f32 %v1579_v3  ;;  %723 = vmatpush.bf16.msra.mxu0 %v1442_v15  ;;  %v1507_v26 = vld [vmem:[%s1929_s29] ss:$0 sm:$0xff]  ;;  %s1932_s21 = scalar_lea.vmem %s1898_s4, %s1699_s15  ;;  %s1580_s14 = smov 104   ;;  %v1587_v53 = vmov -1e+30   ;;  %vm773_vm8 = vcmask 1043456  }
  0x2c   : > { %v1509_v33 = vld [vmem:[%s1932_s21] ss:$0 sm:$0xff]  ;;  %s1581_s24 = smov 120   ;;  %s1582_s27 = smov 96   ;;  %v650_v52 = vand.u32 127, %v649_v51  ;;  %vm971_vm9 = vcmask 130048  }
  0x2d   : > { %s1583_s28 = smov 72   ;;  %s1584_s30 = smov 88   ;;  %vm973_vm10 = vcmask 195584  }
  0x2e   : > { %s1585_s3 = smov 112   ;;  %s1586_s5 = smov 80   ;;  %vm651_vm7 = vcmp.lt.s32.totalorder %v650_v52, 5 }
  0x2f   : > { %724 = vmatpush.bf16.msra.mxu0 %v1441_v16  ;;  %v652_v54 = vsel %vm651_vm7, 0.0, %v1587_v53  ;;  %s1588_s29 = smov 64   ;;  %s1589_s16 = smov 56  }
  0x30   : > { %v1766_v1 = vld [vmem:[%s1761_s2] sm:$0xff]  ;;  %s1931_s17 = scalar_lea.vmem %s1930_s25, %s1699_s15  ;;  %s1590_s19 = smov 40  }
  0x31   : > { %v656_v2 = vsel %vm655_vm1, %v1766_v1, 0.0  ;;  %v1516_v4 = vpop.eup %1515  ;;  %v1508_v29 = vld [vmem:[%s1931_s17] ss:$0 sm:$0xff]  ;;  %s1591_s25 = smov 48   ;;  %s1592_s17 = smov 8  }
  0x32   : > { %657 = vadd.xlane.f32.xlu0 %v656_v2  ;;  %v660_v5 = vmul.f32 32.0, %v1516_v4  ;;  %vm664_vm2 = vweird.f32 %v1516_v4  ;;  %s1593_s18 = smov 24   ;;  %s1594_s20 = smov 16  }
  0x34   : > { %v661_v6 = vsub.f32 1.0, %v660_v5 }
  0x36   : > { %v662_v7 = vmul.f32 %v1516_v4, %v661_v6 }
  0x38   : > { %v663_v8 = vadd.f32 %v1516_v4, %v662_v7 }
  0x3a   : > { %v1770_v9 = vsel %vm664_vm2, %v1516_v4, %v663_v8 }
  0xa5   : > { %v658_v10 = vpop.xlane.xlu0 %657 }
  0xa6   : > { %v666_v11 = vmul.f32 %v1770_v9, %v658_v10 }
  0xa8   : > { %v667_v12 = vsub.f32 %v1766_v1, %v666_v11 }
  0xaa   : > { %v668_v13 = vmul.f32 %v667_v12, %v667_v12 }
  0xac   : > { %v669_v14 = vsel %vm655_vm1, %v668_v13, 0.0 }
  0xad   : > { %670 = vadd.xlane.f32.xlu0 %v669_v14 }
 0x120   : > { %v671_v17 = vpop.xlane.xlu0 %670 }
 0x121   : > { %v672_v18 = vmul.f32 %v671_v17, %v1770_v9 }
 0x123   : > { %v673_v19 = vadd.f32 1e-05, %v672_v18 }
 0x125   : > { %1517 = vrsqrt.f32 %v673_v19  ;;  %vm680_vm4 = vweird.f32 %v673_v19 }
 0x12b   : > { %v1518_v20 = vpop.eup %1517 }
 0x12c   : > { %v675_v21 = vmul.f32 %v1518_v20, %v673_v19  ;;  %vm681_vm3 = vweird.f32 %v1518_v20 }
 0x12d   : > { %vm682_vm5 = vmor %vm680_vm4, %vm681_vm3  ;;  %vm1163_vm3 = vcmask 523264  }
 0x12e   : > { %v676_v22 = vmul.f32 %v1518_v20, %v675_v21 }
 0x130   : > { %v677_v23 = vmul.f32 0.5, %v676_v22 }
 0x132   : > { %v678_v24 = vsub.f32 1.5, %v677_v23 }
 0x134   : > { %v679_v25 = vmul.f32 %v1518_v20, %v678_v24 }
 0x136   : > { %v683_v27 = vsel %vm682_vm5, %v1518_v20, %v679_v25 }
 0x137   : > { %v684_v28 = vmul.f32 %v683_v27, %v667_v12 }
 0x139   : > { %v688_v30 = vmul.f32 %v1507_v26, %v684_v28 }
 0x13b   : > { %v692_v31 = vadd.f32 %v1508_v29, %v688_v30 }
 0x13d   : > { %v698_v32 = vpack.c.bf16 %v692_v31, %v692_v31 }
 0x13f   : > { %1390 = vmatmul.msk.bf16.vlgmr.msra.gmra.mxu0 %vm655_vm1, %v698_v32 }
 0x1bc   : > { %v726_v34 = vpop.f32.mrf.mxu0 }
 0x1bd   : > { %v727_v35 = vadd.f32 %v1509_v33, %v726_v34 }
 0x1bf   : > { %v730_v36 = vpack.c.bf16 %v727_v35, %v727_v35 }
 0x1c1   : > { %v732_v37 = vunpack.c.l.b16 %v730_v36 }
 0x1c3   : > { %v1794_v38 = vpack.c.b16 %v732_v37, %v732_v37 }
 0x1c4   : > { %v728_v39 = vpop.f32.mrf.mxu0 }
 0x1c5   : > { %902 = vrot.lane.b32.xlu0 %v1794_v38, %s1580_s14  ;;  %790 = vrot.lane.b32.xlu2 %v1794_v38, %s1581_s24  ;;  %s1933_s24 = scalar_lea.vmem %s1900_s6, %s1699_s15 }
 0x1c6   : > { %734 = vrot.lane.b32.xlu1 %v1794_v38, %s1582_s27 }
 0x1cd   : > { %904 = vrot.lane.b32.xlu2 %v1794_v38, %s1583_s28 }
 0x1ce   : > { %792 = vrot.lane.b32.xlu1 %v1794_v38, %s1584_s30 }
 0x1d5   : > { %846 = vrot.lane.b32.xlu2 %v1794_v38, %s1585_s3  ;;  %s1935_s3 = scalar_lea.vmem %s1902_s8, %s1699_s15 }
 0x1d6   : > { %848 = vrot.lane.b32.xlu1 %v1794_v38, %s1586_s5 }
 0x21f   : > { %v791_v40 = vpop.permute.xlu2 %790 }
 0x227   : > { %v905_v43 = vpop.permute.xlu2 %904 }
 0x228   : > { %v910_v46 = vsel %vm736_vm6, %v905_v43, 0 }
 0x22f   : > { %v847_v49 = vpop.permute.xlu2 %846 }
 0x237   : > { %v903_v50 = vpop.permute.xlu0 %902 }
 0x238   : > { %v735_v41 = vpop.permute.xlu1 %734 }
 0x239   : > { %v741_v42 = vsel %vm736_vm6, %v735_v41, 0 }
 0x23a   : > { %750 = vmatpush.bf16.xpose.msra.mxu1 %v741_v42 }
 0x240   : > { %v793_v44 = vpop.permute.xlu1 %792 }
 0x241   : > { %1391 = vmatmul.msk.bf16.vlgmr.msra.gmra.mxu1 %vm736_vm6, %v730_v36  ;;  %v798_v45 = vsel %vm736_vm6, %v793_v44, 0 }
 0x242   : > { %807 = vmatpush.bf16.xpose.msra.mxu3 %v798_v45 }
 0x248   : > { %v849_v47 = vpop.permute.xlu1 %848 }
 0x249   : > { %1393 = vmatmul.msk.bf16.vlgmr.msra.gmra.mxu3 %vm736_vm6, %v791_v40  ;;  %v854_v48 = vsel %vm736_vm6, %v849_v47, 0 }
 0x24a   : > { %919 = vmatpush.bf16.xpose.msrb.mxu3 %v910_v46  ;;  %863 = vmatpush.bf16.xpose.msrb.mxu0 %v854_v48 }
 0x251   : > { %1395 = vmatmul.msk.bf16.vlgmr.msrb.gmra.mxu0 %vm736_vm6, %v847_v49 }
 0x259   : > { %1397 = vmatmul.msk.bf16.vlgmr.msrb.gmra.mxu3 %vm736_vm6, %v903_v50 }
 0x2be   : > { %v752_v55 = vpop.f32.mrf.mxu1 }
 0x2bf   : > { %v753_v56 = vadd.f32 %v752_v55, %v652_v54 }
 0x2c1   : > { %v756_v57 = vsel %vm736_vm6, %v753_v56, -inf }
 0x2c2   : > { %757 = vmax.xlane.f32.xlu1 %v756_v57 }
 0x2c6   : > { %v754_v58 = vpop.f32.mrf.mxu1 }
 0x2cc   : > { %v809_v59 = vpop.f32.mrf.mxu3 }
 0x2cd   : > { %v810_v60 = vadd.f32 %v809_v59, %v652_v54 }
 0x2ce   : > { %v865_v61 = vpop.f32.mrf.mxu0 }
 0x2cf   : > { %v813_v62 = vsel %vm736_vm6, %v810_v60, -inf  ;;  %v866_v63 = vadd.f32 %v865_v61, %v652_v54  ;;  %v1444_v61 = vld [vmem:[%s1725_s0 + $0x8] sm:$0xff] }
 0x2d0   : > { %814 = vmax.xlane.f32.xlu2 %v813_v62  ;;  %1005 = vmatpush.bf16.msra.mxu0 %v1444_v61  ;;  %v1443_v62 = vld [vmem:[%s1725_s0] sm:$0xff] }
 0x2d1   : > { %v869_v3 = vsel %vm736_vm6, %v866_v63, -inf }
 0x2d4   : > { %v811_v0 = vpop.f32.mrf.mxu3  ;;  %1006 = vmatpush.bf16.msra.mxu0 %v1443_v62 }
 0x2d6   : > { %v867_v2 = vpop.f32.mrf.mxu0 }
 0x2d8   : > { %870 = vmax.xlane.f32.xlu2 %v869_v3 }
 0x2dc   : > { %v921_v4 = vpop.f32.mrf.mxu3 }
 0x2dd   : > { %v922_v5 = vadd.f32 %v921_v4, %v652_v54 }
 0x2df   : > { %v925_v6 = vsel %vm736_vm6, %v922_v5, -inf }
 0x2e0   : > { %926 = vmax.xlane.f32.xlu0 %v925_v6 }
 0x2e4   : > { %v923_v7 = vpop.f32.mrf.mxu3 }
 0x2e5   : > { %v1510_v7 = vld [vmem:[%s1933_s24] ss:$0 sm:$0xff] }
 0x2f0   : > { %768 = vrot.lane.b32.xlu2 %v1794_v38, %s1588_s29 }
 0x2f4   : > { %825 = vrot.lane.b32.xlu0 %v1794_v38, %s1589_s16 }
 0x2f8   : > { %937 = vrot.lane.b32.xlu2 %v1794_v38, %s1590_s19 }
 0x2fc   : > { %881 = vrot.lane.b32.xlu0 %v1794_v38, %s1591_s25 }
 0x335   : > { %v758_v8 = vpop.xlane.xlu1 %757 }
 0x336   : > { %v759_v10 = vsub.f32 %v753_v56, %v758_v8 }
 0x338   : > { %v760_v11 = vmul.f32 1.442695, %v759_v10 }
 0x33a   : > { %1519 = vpow2.f32 %v760_v11 }
 0x340   : > { %v1520_v12 = vpop.eup %1519 }
 0x341   : > { %v762_v13 = vsel %vm736_vm6, %v1520_v12, 0.0 }
 0x342   : > { %763 = vadd.xlane.f32.xlu1 %v762_v13 }
 0x343   : > { %v815_v14 = vpop.xlane.xlu2 %814 }
 0x344   : > { %v816_v15 = vsub.f32 %v810_v60, %v815_v14 }
 0x346   : > { %v817_v16 = vmul.f32 1.442695, %v816_v15 }
 0x348   : > { %1521 = vpow2.f32 %v817_v16 }
 0x34b   : > { %v871_v17 = vpop.xlane.xlu2 %870 }
 0x34c   : > { %v872_v24 = vsub.f32 %v866_v63, %v871_v17 }
 0x34e   : > { %v1522_v18 = vpop.eup %1521  ;;  %v873_v26 = vmul.f32 1.442695, %v872_v24 }
 0x34f   : > { %v819_v19 = vsel %vm736_vm6, %v1522_v18, 0.0 }
 0x350   : > { %820 = vadd.xlane.f32.xlu1 %v819_v19  ;;  %v1446_v19 = vld [vmem:[%s1742_s26 + $0x8] sm:$0xff] }
 0x353   : > { %v927_v20 = vpop.xlane.xlu0 %926  ;;  %v769_v21 = vpop.permute.xlu2 %768 }
 0x354   : > { %v928_v22 = vsub.f32 %v922_v5, %v927_v20  ;;  %v775_v23 = vsel %vm773_vm8, %v769_v21, 0  ;;  %v1445_v20 = vld [vmem:[%s1742_s26] sm:$0xff]  ;;  %s1934_s26 = scalar_lea.vmem %s1901_s7, %s1699_s15 }
 0x355   : > { %784 = vmatpush.bf16.msra.mxu2 %v775_v23 }
 0x356   : > { %v929_v25 = vmul.f32 1.442695, %v928_v22 }
 0x358   : > { %1523 = vpow2.f32 %v929_v25 }
 0x359   : > { %1525 = vpow2.f32 %v873_v26 }
 0x35b   : > { %v938_v38 = vpop.permute.xlu2 %937 }
 0x35c   : > { %v943_v40 = vsel %vm773_vm8, %v938_v38, 0 }
 0x35e   : > { %v1524_v27 = vpop.eup %1523 }
 0x35f   : > { %v931_v28 = vsel %vm736_vm6, %v1524_v27, 0.0  ;;  %v1526_v29 = vpop.eup %1525 }
 0x360   : > { %932 = vadd.xlane.f32.xlu1 %v931_v28  ;;  %v875_v32 = vsel %vm736_vm6, %v1526_v29, 0.0 }
 0x366   : > { %v826_v30 = vpop.permute.xlu0 %825 }
 0x367   : > { %v831_v31 = vsel %vm773_vm8, %v826_v30, 0 }
 0x368   : > { %840 = vmatpush.bf16.msrb.mxu2 %v831_v31  ;;  %876 = vadd.xlane.f32.xlu1 %v875_v32  ;;  %v1512_v31 = vld [vmem:[%s1935_s3] ss:$0 sm:$0xff] }
 0x36e   : > { %v882_v33 = vpop.permute.xlu0 %881 }
 0x36f   : > { %v887_v34 = vsel %vm773_vm8, %v882_v33, 0 }
 0x370   : > { %896 = vmatpush.bf16.msrb.mxu1 %v887_v34 }
 0x374   : > { %1075 = vmatpush.bf16.msra.mxu1 %v1446_v19 }
 0x378   : > { %1076 = vmatpush.bf16.msra.mxu1 %v1445_v20 }
 0x3b5   : > { %v764_v35 = vpop.xlane.xlu1 %763 }
 0x3b6   : > { %1527 = vrcp.f32 %v764_v35  ;;  %v1513_v35 = vld [vmem:[%s627_s13] ss:$0 sm:$0xff] }
 0x3bc   : > { %v1528_v36 = vpop.eup %1527 }
 0x3bd   : > { %v766_v37 = vmul.f32 %v1528_v36, %v1520_v12 }
 0x3bf   : > { %v767_v39 = vpack.c.bf16 %v766_v37, %v766_v37 }
 0x3c1   : > { %1392 = vmatmul.msk.bf16.vlgmr.msra.gmra.mxu2 %vm736_vm6, %v767_v39 }
 0x3c2   : > { %952 = vmatpush.bf16.msra.mxu2 %v943_v40 }
 0x3c3   : > { %v821_v41 = vpop.xlane.xlu1 %820 }
 0x3c4   : > { %1529 = vrcp.f32 %v821_v41 }
 0x3ca   : > { %v1530_v42 = vpop.eup %1529 }
 0x3cb   : > { %v823_v43 = vmul.f32 %v1530_v42, %v1522_v18  ;;  %v1450_v42 = vld [vmem:[%s1756_s22 + $0x18] sm:$0xff] }
 0x3cc   : > { %1171 = vmatpush.bf16.msra.mxu3 %v1450_v42 }
 0x3cd   : > { %v824_v44 = vpack.c.bf16 %v823_v43, %v823_v43 }
 0x3d1   : > { %1394 = vmatmul.msk.bf16.vlgmr.msrb.gmra.mxu2 %vm736_vm6, %v824_v44 }
 0x3d3   : > { %v933_v45 = vpop.xlane.xlu1 %932 }
 0x3d4   : > { %1531 = vrcp.f32 %v933_v45 }
 0x3da   : > { %v1532_v46 = vpop.eup %1531 }
 0x3db   : > { %v935_v47 = vmul.f32 %v1532_v46, %v1524_v27  ;;  %v877_v48 = vpop.xlane.xlu1 %876 }
 0x3dc   : > { %1533 = vrcp.f32 %v877_v48 }
 0x3dd   : > { %v936_v49 = vpack.c.bf16 %v935_v47, %v935_v47  ;;  %v1449_v47 = vld [vmem:[%s1756_s22 + $0x10] sm:$0xff] }
 0x3de   : > { %1172 = vmatpush.bf16.msra.mxu3 %v1449_v47 }
 0x3e1   : > { %1398 = vmatmul.msk.bf16.vlgmr.msra.gmra.mxu2 %vm736_vm6, %v936_v49 }
 0x3e2   : > { %v1534_v50 = vpop.eup %1533 }
 0x3e3   : > { %v879_v51 = vmul.f32 %v1534_v50, %v1526_v29  ;;  %v1511_v29 = vld [vmem:[%s1934_s26] ss:$0 sm:$0xff] }
 0x3e5   : > { %v880_v52 = vpack.c.bf16 %v879_v51, %v879_v51 }
 0x3e7   : > { %1396 = vmatmul.msk.bf16.vlgmr.msrb.gmra.mxu1 %vm736_vm6, %v880_v52  ;;  %v1448_v52 = vld [vmem:[%s1756_s22 + $0x8] sm:$0xff] }
 0x3e8   : > { %1173 = vmatpush.bf16.msra.mxu3 %v1448_v52 }
 0x444   : > { %v786_v53 = vpop.f32.mrf.mxu2 }
 0x44c   : > { %v788_v54 = vpop.f32.mrf.mxu2 }
 0x454   : > { %v842_v55 = vpop.f32.mrf.mxu2 }
 0x455   : > { %959 = vrot.lane.b32.xlu1 %v842_v55, %s1592_s17 }
 0x45c   : > { %v844_v56 = vpop.f32.mrf.mxu2 }
 0x45d   : > { %v1447_v56 = vld [vmem:[%s1756_s22] sm:$0xff] }
 0x45e   : > { %1174 = vmatpush.bf16.msra.mxu3 %v1447_v56 }
 0x464   : > { %v898_v57 = vpop.f32.mrf.mxu1  ;;  %v954_v58 = vpop.f32.mrf.mxu2 }
 0x465   : > { %967 = vrot.lane.b32.xlu0 %v954_v58, %s1593_s18  ;;  %963 = vrot.lane.b32.xlu2 %v898_v57, %s1594_s20 }
 0x46c   : > { %v900_v59 = vpop.f32.mrf.mxu1  ;;  %v956_v60 = vpop.f32.mrf.mxu2 }
 0x4bf   : > { %v964_v2 = vpop.permute.xlu2 %963 }
 0x4c7   : > { %v960_v63 = vpop.permute.xlu1 %959 }
 0x4c8   : > { %v970_v0 = vsel %vm736_vm6, %v786_v53, %v960_v63 }
 0x4c9   : > { %v972_v4 = vsel %vm971_vm9, %v970_v0, %v964_v2 }
 0x4d7   : > { %v968_v3 = vpop.permute.xlu0 %967 }
 0x4d8   : > { %v974_v5 = vsel %vm973_vm10, %v972_v4, %v968_v3 }
 0x4d9   : > { %v980_v6 = vpack.c.bf16 %v974_v5, %v974_v5 }
 0x4db   : > { %1407 = vmatmul.msk.bf16.vlgmr.msra.gmra.mxu0 %vm655_vm1, %v980_v6 }
 0x558   : > { %v1008_v8 = vpop.f32.mrf.mxu0 }
 0x559   : > { %v1009_v10 = vadd.f32 %v1510_v7, %v1008_v8 }
 0x55b   : > { %v1841_v11 = vadd.f32 %v1009_v10, %v1766_v1 }
 0x55d   : > { %v1015_v12 = vsel %vm655_vm1, %v1841_v11, 0.0 }
 0x55e   : > { %1016 = vadd.xlane.f32.xlu2 %v1015_v12 }
 0x560   : > { %v1010_v13 = vpop.f32.mrf.mxu0 }
 0x5d1   : > { %v1017_v14 = vpop.xlane.xlu2 %1016 }
 0x5d2   : > { %v1018_v15 = vmul.f32 %v1017_v14, %v1770_v9 }
 0x5d4   : > { %v1019_v16 = vsub.f32 %v1841_v11, %v1018_v15 }
 0x5d6   : > { %v1020_v17 = vmul.f32 %v1019_v16, %v1019_v16 }
 0x5d8   : > { %v1021_v18 = vsel %vm655_vm1, %v1020_v17, 0.0 }
 0x5d9   : > { %1022 = vadd.xlane.f32.xlu0 %v1021_v18 }
 0x64c   : > { %v1023_v1 = vpop.xlane.xlu0 %1022 }
 0x64d   : > { %v1024_v21 = vmul.f32 %v1023_v1, %v1770_v9 }
 0x64f   : > { %v1025_v22 = vadd.f32 1e-05, %v1024_v21  ;;  %v1514_v21 = vld [vmem:[%s635_s23] ss:$0 sm:$0xff] }
 0x651   : > { %1535 = vrsqrt.f32 %v1025_v22  ;;  %vm1032_vm12 = vweird.f32 %v1025_v22 }
 0x657   : > { %v1536_v23 = vpop.eup %1535 }
 0x658   : > { %v1027_v24 = vmul.f32 %v1536_v23, %v1025_v22  ;;  %vm1033_vm11 = vweird.f32 %v1536_v23 }
 0x659   : > { %vm1034_vm13 = vmor %vm1032_vm12, %vm1033_vm11 }
 0x65a   : > { %v1028_v25 = vmul.f32 %v1536_v23, %v1027_v24 }
 0x65c   : > { %v1029_v26 = vmul.f32 0.5, %v1028_v25 }
 0x65e   : > { %v1030_v27 = vsub.f32 1.5, %v1029_v26 }
 0x660   : > { %v1031_v28 = vmul.f32 %v1536_v23, %v1030_v27 }
 0x662   : > { %v1035_v30 = vsel %vm1034_vm13, %v1536_v23, %v1031_v28 }
 0x663   : > { %v1036_v9 = vmul.f32 %v1035_v30, %v1019_v16 }
 0x665   : > { %v1040_v32 = vmul.f32 %v1511_v29, %v1036_v9 }
 0x667   : > { %v1044_v33 = vadd.f32 %v1512_v31, %v1040_v32 }
 0x669   : > { %v1050_v34 = vpack.c.bf16 %v1044_v33, %v1044_v33 }
 0x66b   : > { %1416 = vmatmul.msk.bf16.vlgmr.msra.gmra.mxu1 %vm655_vm1, %v1050_v34 }
 0x6e8   : > { %v1078_v36 = vpop.f32.mrf.mxu1 }
 0x6e9   : > { %v1079_v37 = vadd.f32 %v1513_v35, %v1078_v36 }
 0x6eb   : > { %v1083_v38 = vmul.f32 0.70710677, %v1079_v37  ;;  %v1082_v18 = vmul.f32 0.5, %v1079_v37 }
 0x6ed   : > { %v1084_v39 = vmul.f32 %v1083_v38, %v1083_v38 }
 0x6ef   : > { %v1085_v40 = vmin.f32 %v1084_v39, 16.0 }
 0x6f0   : > { %v1080_v41 = vpop.f32.mrf.mxu1 }
 0x6f1   : > { %v1086_v43 = vmul.f32 2.1237322e-06, %v1085_v40  ;;  %v1097_v44 = vmul.f32 3.8918573e-05, %v1085_v40 }
 0x6f3   : > { %v1087_v45 = vadd.f32 0.00028619796, %v1086_v43  ;;  %v1098_v46 = vadd.f32 0.001143296, %v1097_v44 }
 0x6f5   : > { %v1088_v48 = vmul.f32 %v1087_v45, %v1085_v40  ;;  %v1099_v49 = vmul.f32 %v1098_v46, %v1085_v40 }
 0x6f7   : > { %v1100_v50 = vadd.f32 0.014752088, %v1099_v49  ;;  %v1089_v51 = vadd.f32 0.0036580483, %v1088_v48 }
 0x6f9   : > { %v1101_v53 = vmul.f32 %v1100_v50, %v1085_v40  ;;  %v1090_v55 = vmul.f32 %v1089_v51, %v1085_v40 }
 0x6fb   : > { %v1102_v54 = vadd.f32 0.112945676, %v1101_v53  ;;  %v1091_v59 = vadd.f32 0.05243302, %v1090_v55 }
 0x6fd   : > { %v1103_v57 = vmul.f32 %v1102_v54, %v1085_v40  ;;  %v1092_v62 = vmul.f32 %v1091_v59, %v1085_v40 }
 0x6ff   : > { %v1104_v58 = vadd.f32 0.4994258, %v1103_v57  ;;  %v1093_v63 = vadd.f32 0.18741608, %v1092_v62 }
 0x701   : > { %v1105_v60 = vmul.f32 %v1104_v58, %v1085_v40  ;;  %v1094_v2 = vmul.f32 %v1093_v63, %v1085_v40 }
 0x703   : > { %v1106_v61 = vadd.f32 1.0, %v1105_v60  ;;  %v1095_v6 = vadd.f32 1.1283791, %v1094_v2 }
 0x705   : > { %1537 = vrcp.f32 %v1106_v61  ;;  %v1118_v5 = vand.u32 2147483648, %v1106_v61  ;;  %v1116_v8 = vand.u32 2147483647, %v1106_v61  ;;  %vm1112_vm15 = vweird.f32 %v1106_v61 }
 0x706   : > { %v1096_v13 = vmul.f32 %v1095_v6, %v1083_v38 }
 0x707   : > { %v1119_v12 = vor.u32 1.1754944e-38, %v1118_v5  ;;  %vm1117_vm2 = vcmp.eq.f32.partialorder %v1116_v8, 8.507059e+37 }
 0x70b   : > { %v1538_v0 = vpop.eup %1537 }
 0x70c   : > { %v1108_v3 = vmul.f32 %v1538_v0, %v1106_v61  ;;  %vm1113_vm14 = vweird.f32 %v1538_v0 }
 0x70d   : > { %vm1114_vm0 = vmor %vm1112_vm15, %vm1113_vm14 }
 0x70e   : > { %v1109_v4 = vsub.f32 1.0, %v1108_v3 }
 0x710   : > { %v1110_v7 = vmul.f32 %v1538_v0, %v1109_v4 }
 0x712   : > { %v1111_v10 = vadd.f32 %v1538_v0, %v1110_v7 }
 0x714   : > { %v1115_v14 = vsel %vm1114_vm0, %v1538_v0, %v1111_v10 }
 0x715   : > { %v1120_v15 = vsel %vm1117_vm2, %v1119_v12, %v1115_v14 }
 0x716   : > { %v1121_v16 = vmul.f32 %v1120_v15, %v1096_v13 }
 0x718   : > { %v1417_v17 = vclamps-f32 %v1121_v16, 1.0 }
 0x71a   : > { %v1124_v19 = vadd.f32 1.0, %v1417_v17 }
 0x71c   : > { %v1125_v20 = vmul.f32 %v1124_v19, %v1082_v18 }
 0x71e   : > { %v1135_v1 = vpack.c.bf16 %v1125_v20, %v1125_v20 }
 0x720   : > { %1434 = vmatmul.msk.bf16.vlgmr.msra.gmra.mxu3 %vm1163_vm3, %v1135_v1 }
 0x7a3   : > { %v1176_v22 = vpop.f32.mrf.mxu3 }
 0x7a4   : > { %v1177_v23 = vadd.f32 %v1514_v21, %v1176_v22 }
 0x7a6   : > { %v1180_v24 = vadd.f32 %v1177_v23, %v1841_v11 }
 0x7a8   : > { %1181 = vst.msk [vmem:[%s1761_s2] sm:$0xff] %vm655_vm1, %v1180_v24 }
 0x7ab   : > { %v1178_v25 = vpop.f32.mrf.mxu3 }
 0x7ac PF: > { %s1936_s16 = sld [smem:[#allocation5_spill]] }
 0x7ad   : > { %s1937_s25 = sld [smem:[#allocation3_spill]] }
 0x7ae   : > { %s1938_s26 = sld [smem:[#allocation4_spill]] }
 0x7af   : > { %s1939_s27 = sld [smem:[#allocation6_spill]] }
 0x7b0   : > { %s1940_s28 = sld [smem:[#allocation7_spill]] }
 0x7b2   : > { %s23_s29 = sadd.s32 1, %s1936_s16  }
 0x7b3   : > { %p20_p8 = scmp.ge.s32.totalorder %s23_s29, 6  }
 0x7b5   :  { %22 = sbr.rel (!%p20_p8) target bundleno = 6 (0x6), region = 142 }

</bundles_post_ra>
